<compile_context>
chip_gen: v5e
topology: v5e:2x2
jax: 0.10.0
libtpu: 0.0.40
codegen_flags: <defaults>
</compile_context>

<pallas_src>
import functools

import jax
import jax.numpy as jnp
from jax import lax
from jax.experimental import pallas as pl
from jax.experimental.pallas import tpu as pltpu

BF16 = jnp.bfloat16
F32 = jnp.float32


# ----------------------------------------------------------------------------
# helpers
# ----------------------------------------------------------------------------
def _round_up(x, m):
    return (x + m - 1) // m * m


def _full_spec(arr):
    """BlockSpec mapping the whole array as a single (constant) block."""
    nd = arr.ndim
    return pl.BlockSpec(arr.shape, lambda t, _nd=nd: (0,) * _nd)


def _pick_tm(Mp, tm_max=256):
    """M-tile for the tiled linear: multiple of 8, prefer >=2 tiles (v7x)."""
    tm = Mp
    for cand in (256, 128, 64, 32, 16, 8):
        if cand <= min(tm_max, Mp) and Mp % cand == 0:
            tm = cand
            break
    if tm == Mp and Mp >= 16 and (Mp // 2) % 8 == 0:
        tm = Mp // 2
    return tm


def _pick_time_tile(Tp, kt_max=32):
    """Time tile for the vocab head: multiple of 8 dividing Tp."""
    for cand in (32, 24, 16, 8):
        if cand <= min(kt_max, Tp) and Tp % cand == 0:
            return cand
    return 8 if Tp % 8 == 0 else Tp


# ----------------------------------------------------------------------------
# Pallas kernel: tiled linear (+ optional ReLU), grid over M ("parallel").
# Used for the fused f4|f8, image and hoisted attention projections.
# ----------------------------------------------------------------------------
def _linear_kernel(x_ref, w_ref, b_ref, o_ref, *, relu):
    y = jnp.dot(x_ref[...], w_ref[...], preferred_element_type=F32) + b_ref[...]
    if relu:
        y = jnp.maximum(y, 0.0)
    o_ref[...] = y


def linear(x, w, b, *, relu=False, tm_max=256):
    M, Kd = x.shape
    N = w.shape[1]
    Mp = _round_up(M, 8)
    tm = _pick_tm(Mp, tm_max)
    xp = x if Mp == M else jnp.pad(x, ((0, Mp - M), (0, 0)))
    out = pl.pallas_call(
        functools.partial(_linear_kernel, relu=relu),
        grid=(Mp // tm,),
        in_specs=[pl.BlockSpec((tm, Kd), lambda i: (i, 0)),
                  pl.BlockSpec((Kd, N), lambda i: (0, 0)),
                  pl.BlockSpec((1, N), lambda i: (0, 0))],
        out_specs=pl.BlockSpec((tm, N), lambda i: (i, 0)),
        out_shape=jax.ShapeDtypeStruct((Mp, N), F32),
        compiler_params=pltpu.CompilerParams(dimension_semantics=("parallel",)),
    )(xp.astype(BF16), w.astype(BF16), b.astype(F32))
    return out if Mp == M else out[:M]


# ----------------------------------------------------------------------------
# Pallas kernel: bidirectional article LSTM (nn.LSTM, batch_first,
# bidirectional, 1 layer so dropout never applies). Forward stream is padded
# at the end; backward stream is reversed then padded, so both directions run
# "forward" with zero-state starts that exactly match torch. K steps per grid
# iteration, bf16 outputs, per-direction weights (no lane concat).
# ----------------------------------------------------------------------------
def bilstm(x_tm, wif, whf, bfv, wib, whb, bbv, k_max=8):
    Ta, Bp, D = x_tm.shape
    K = min(k_max, Ta)
    Tap = _round_up(Ta, K)
    pad = Tap - Ta
    x_rev = jnp.flip(x_tm, axis=0)
    if pad:
        x_f = jnp.pad(x_tm, ((0, pad), (0, 0), (0, 0)))
        x_r = jnp.pad(x_rev, ((0, pad), (0, 0), (0, 0)))
    else:
        x_f, x_r = x_tm, x_rev

    def kernel(xf_ref, xr_ref, wif_ref, whf_ref, bf_ref, wib_ref, whb_ref, bb_ref,
               outf_ref, outr_ref, hf_s, cf_s, hb_s, cb_s):
        @pl.when(pl.program_id(0) == 0)
        def _():
            hf_s[...] = jnp.zeros_like(hf_s)
            cf_s[...] = jnp.zeros_like(cf_s)
            hb_s[...] = jnp.zeros_like(hb_s)
            cb_s[...] = jnp.zeros_like(cb_s)

        wi_f = wif_ref[...]; wh_f = whf_ref[...]; b_f = bf_ref[...]
        wi_b = wib_ref[...]; wh_b = whb_ref[...]; b_b = bb_ref[...]

        def cell(x, h, c, wi, wh, b):
            g = (jnp.dot(x, wi, preferred_element_type=F32)
                 + jnp.dot(h.astype(BF16), wh, preferred_element_type=F32) + b)
            ig = jax.nn.sigmoid(g[:, 0:D])
            fg = jax.nn.sigmoid(g[:, D:2 * D])
            gg = jnp.tanh(g[:, 2 * D:3 * D])
            og = jax.nn.sigmoid(g[:, 3 * D:4 * D])
            cn = fg * c + ig * gg
            hn = og * jnp.tanh(cn)
            return hn, cn

        def step(k, carry):
            hf, cf, hb, cb = carry
            hf, cf = cell(xf_ref[k], hf, cf, wi_f, wh_f, b_f)
            hb, cb = cell(xr_ref[k], hb, cb, wi_b, wh_b, b_b)
            outf_ref[k] = hf.astype(BF16)
            outr_ref[k] = hb.astype(BF16)
            return (hf, cf, hb, cb)

        hf, cf, hb, cb = lax.fori_loop(
            0, K, step, (hf_s[...], cf_s[...], hb_s[...], cb_s[...]), unroll=True)
        hf_s[...] = hf
        cf_s[...] = cf
        hb_s[...] = hb
        cb_s[...] = cb

    out_f, out_r = pl.pallas_call(
        kernel,
        grid=(Tap // K,),
        in_specs=[pl.BlockSpec((K, Bp, D), lambda i: (i, 0, 0)),
                  pl.BlockSpec((K, Bp, D), lambda i: (i, 0, 0)),
                  _full_spec(wif), _full_spec(whf), _full_spec(bfv),
                  _full_spec(wib), _full_spec(whb), _full_spec(bbv)],
        out_specs=(pl.BlockSpec((K, Bp, D), lambda i: (i, 0, 0)),
                   pl.BlockSpec((K, Bp, D), lambda i: (i, 0, 0))),
        out_shape=(jax.ShapeDtypeStruct((Tap, Bp, D), BF16),
                   jax.ShapeDtypeStruct((Tap, Bp, D), BF16)),
        scratch_shapes=[pltpu.VMEM((Bp, D), F32)] * 4,
        compiler_params=pltpu.CompilerParams(dimension_semantics=("arbitrary",)),
    )(x_f, x_r, wif, whf, bfv, wib, whb, bbv)
    out_b = jnp.flip(out_r[:Ta], axis=0)
    return out_f[:Ta], out_b


# ----------------------------------------------------------------------------
# Pallas kernel: recurrent decoder loop (attention1 + LSTMCell + f1/f2 gating
# + attention2). Emits per-step dist2 / gc / h1; the vocab head is hoisted to
# a separate parallel kernel. Encoder-side projections precomputed.
# ----------------------------------------------------------------------------
def _make_decoder_kernel(D, K):
    def kernel(proj1_ref, proj2_ref, enc1_ref, enc2_ref, addmask_ref, emb_ref,
               wda1_ref, bda1_ref, wfa1_ref, bfa1_ref,
               wda2_ref, bda2_ref, wfa2_ref, bfa2_ref,
               cwa_ref, cwe_ref, cwh_ref, cb_ref,
               f1wa_ref, f1wb_ref, f1b_ref,
               f2wa_ref, f2wb_ref, f2b_ref,
               dist2_out, gc_out, h1_out,
               h_s, c_s, h3_s, c3_s):
        @pl.when(pl.program_id(0) == 0)
        def _():
            h_s[...] = jnp.zeros_like(h_s)
            c_s[...] = jnp.zeros_like(c_s)
            h3_s[...] = jnp.zeros_like(h3_s)
            c3_s[...] = jnp.zeros_like(c3_s)

        # time-invariant values: load once per grid block
        proj1 = proj1_ref[...]
        proj2 = proj2_ref[...]
        enc1 = enc1_ref[...]
        enc2 = enc2_ref[...]
        addmask = addmask_ref[...]
        wda1 = wda1_ref[...]; bda1 = bda1_ref[...]
        wfa1 = wfa1_ref[...]; bfa1 = bfa1_ref[...]
        wda2 = wda2_ref[...]; bda2 = bda2_ref[...]
        wfa2 = wfa2_ref[...]; bfa2 = bfa2_ref[...]
        cwa = cwa_ref[...]; cwe = cwe_ref[...]; cwh = cwh_ref[...]; cb = cb_ref[...]
        f1wa = f1wa_ref[...]; f1wb = f1wb_ref[...]; f1b = f1b_ref[...]
        f2wa = f2wa_ref[...]; f2wb = f2wb_ref[...]; f2b = f2b_ref[...]

        def mm(x, w):
            return jnp.dot(x.astype(BF16), w, preferred_element_type=F32)

        def softmax_rows(score):
            m = jnp.max(score, axis=1, keepdims=True)
            ex = jnp.exp(score - m)
            return ex * pl.reciprocal(jnp.sum(ex, axis=1, keepdims=True), approx=True)

        def step(k, carry):
            h, c, h3p, c3p = carry
            emb_t = emb_ref[k]                                    # (B, D) f32

            # attention1 over [article hiddens ; image features], no mask.
            att = mm(h, wda1) + bda1                              # (B, A)
            e1 = jnp.tanh(proj1 + att[:, None, :])                # (B, L1, A)
            s1 = jnp.sum(e1 * wfa1[None, :, :], axis=2) + bfa1    # (B, L1)
            alpha1 = softmax_rows(s1)                             # f32
            awa = jnp.sum(alpha1[:, :, None] * enc1, axis=1)      # (B, D), VPU

            # LSTMCell on cat([awa, emb]) as split matmuls (no lane concat)
            gates = mm(awa, cwa) + mm(emb_t, cwe) + mm(h, cwh) + cb
            ig = jax.nn.sigmoid(gates[:, 0:D])
            fg = jax.nn.sigmoid(gates[:, D:2 * D])
            gg = jnp.tanh(gates[:, 2 * D:3 * D])
            og = jax.nn.sigmoid(gates[:, 3 * D:4 * D])
            c1 = fg * c + ig * gg
            h1 = og * jnp.tanh(c1)

            # f1/f2 gating; zero scratch at t==0 == torch zero init_hidden
            h_new = jnp.maximum(mm(h1, f1wa) + mm(h3p, f1wb) + f1b, 0.0)
            c_new = jnp.maximum(mm(c1, f2wa) + mm(c3p, f2wb) + f2b, 0.0)

            # attention2 over hiddens2 with precomputed additive mask
            attb = mm(h1, wda2) + bda2
            e2 = jnp.tanh(proj2 + attb[:, None, :])               # (B, Ta, A)
            s2 = jnp.sum(e2 * wfa2[None, :, :], axis=2) + bfa2 + addmask
            dist2 = softmax_rows(s2)                              # (B, Ta) f32
            gc = jnp.sum(dist2[:, :, None] * enc2, axis=1)        # (B, D)

            dist2_out[k] = dist2
            gc_out[k] = gc
            h1_out[k] = h1
            return (h_new, c_new, h1, c1)

        carry = (h_s[...], c_s[...], h3_s[...], c3_s[...])
        h, c, h3, c3 = lax.fori_loop(0, K, step, carry, unroll=True)
        h_s[...] = h
        c_s[...] = c
        h3_s[...] = h3
        c3_s[...] = c3

    return kernel


def decoder_loop(kp, proj1, proj2, enc1, enc2, addmask, emb_tm, K=8):
    Tp, Bp, D = emb_tm.shape
    Ta = enc2.shape[1]
    weights = [kp['att1_wda'], kp['att1_bda'], kp['att1_wfa'], kp['att1_bfa'],
               kp['att2_wda'], kp['att2_bda'], kp['att2_wfa'], kp['att2_bfa'],
               kp['cell_wa'], kp['cell_we'], kp['cell_wh'], kp['cell_b'],
               kp['f1_wa'], kp['f1_wb'], kp['f1_b'],
               kp['f2_wa'], kp['f2_wb'], kp['f2_b']]
    fixed = [proj1, proj2, enc1, enc2, addmask]
    ins = fixed + [emb_tm] + weights
    # TODO(synk): single-buffer the constant full-block operands via
    # pipeline_mode=pl.Buffered(1) once validated on the target jax build; the
    # vocab head / one-hot were already removed from this kernel so the v7x
    # 64-MiB VMEM budget holds even double-buffered at these sizes.
    in_specs = ([_full_spec(a) for a in fixed]
                + [pl.BlockSpec((K, Bp, D), lambda t: (t, 0, 0))]
                + [_full_spec(w) for w in weights])

    dist2_tm, gc_tm, h1_tm = pl.pallas_call(
        _make_decoder_kernel(D, K),
        grid=(Tp // K,),
        in_specs=in_specs,
        out_specs=(pl.BlockSpec((K, Bp, Ta), lambda t: (t, 0, 0)),
                   pl.BlockSpec((K, Bp, D), lambda t: (t, 0, 0)),
                   pl.BlockSpec((K, Bp, D), lambda t: (t, 0, 0))),
        out_shape=(jax.ShapeDtypeStruct((Tp, Bp, Ta), F32),
                   jax.ShapeDtypeStruct((Tp, Bp, D), F32),
                   jax.ShapeDtypeStruct((Tp, Bp, D), F32)),
        scratch_shapes=[pltpu.VMEM((Bp, D), F32)] * 4,
        compiler_params=pltpu.CompilerParams(dimension_semantics=("arbitrary",)),
    )(*ins)
    return dist2_tm, gc_tm, h1_tm


# ----------------------------------------------------------------------------
# Pallas kernel: hoisted vocab head (fc1 + fc + log_softmax + copy matmul +
# pointer gate + decode-length masking), time-tiled "parallel" grid over all
# (B, Tdec) rows at once.
# ----------------------------------------------------------------------------
def _head_kernel(gc_ref, h1_ref, emb_ref, dist2_ref, valid_ref, onehot_ref,
                 fc1wa_ref, fc1wb_ref, fc1b_ref, fcw_ref, fcb_ref,
                 pwa_ref, pwb_ref, pwc_ref, pb_ref, out_ref):
    Bp, Kt, D = gc_ref.shape
    Vp = fcw_ref.shape[1]
    M = Bp * Kt

    def mm(x, w):
        return jnp.dot(x.astype(BF16), w, preferred_element_type=F32)

    gc = gc_ref[...].reshape(M, D)
    h1 = h1_ref[...].reshape(M, D)
    emb = emb_ref[...].reshape(M, D)

    # fc1 on cat([gc, h1]) as split matmuls, then fc over the padded vocab
    h10 = jnp.tanh(mm(gc, fc1wa_ref[...]) + mm(h1, fc1wb_ref[...]) + fc1b_ref[...])
    logits = mm(h10, fcw_ref[...]) + fcb_ref[...]        # padded cols biased -1e9
    mx = jnp.max(logits, axis=1, keepdims=True)
    z = logits - mx
    logp = z - jnp.log(jnp.sum(jnp.exp(z), axis=1, keepdims=True))

    # copy mechanism: scatter_add(dist2 over article ids) == dist2 @ onehot
    attn = jnp.einsum('bkt,btv->bkv', dist2_ref[...], onehot_ref[...],
                      preferred_element_type=F32).reshape(M, Vp)

    # pointer/generator gate on cat([emb, gc, h1]) as split matmuls
    pg = jax.nn.sigmoid(mm(emb, pwa_ref[...]) + mm(gc, pwb_ref[...])
                        + mm(h1, pwc_ref[...]) + pb_ref[...])      # (M, 1)

    preds = (pg * logp + (1.0 - pg) * attn) * valid_ref[...].reshape(M, 1)
    out_ref[...] = preds.reshape(Bp, Kt, Vp)


def vocab_head(kp, gc_bm, h1_bm, emb_bm, dist2_bm, valid, onehot, Vp):
    Bp, Tp, D = gc_bm.shape
    Ta = dist2_bm.shape[2]
    Kt = _pick_time_tile(Tp)
    fixed = [onehot, kp['fc1_wa'], kp['fc1_wb'], kp['fc1_b'], kp['fc_w'], kp['fc_b'],
             kp['p_wa'], kp['p_wb'], kp['p_wc'], kp['p_b']]
    out = pl.pallas_call(
        _head_kernel,
        grid=(Tp // Kt,),
        in_specs=[pl.BlockSpec((Bp, Kt, D), lambda t: (0, t, 0)),
                  pl.BlockSpec((Bp, Kt, D), lambda t: (0, t, 0)),
                  pl.BlockSpec((Bp, Kt, D), lambda t: (0, t, 0)),
                  pl.BlockSpec((Bp, Kt, Ta), lambda t: (0, t, 0)),
                  pl.BlockSpec((Bp, Kt, 1), lambda t: (0, t, 0))]
                 + [_full_spec(a) for a in fixed],
        out_specs=pl.BlockSpec((Bp, Kt, Vp), lambda t: (0, t, 0)),
        out_shape=jax.ShapeDtypeStruct((Bp, Tp, Vp), F32),
        compiler_params=pltpu.CompilerParams(dimension_semantics=("parallel",)),
    )(gc_bm, h1_bm, emb_bm, dist2_bm, valid, *fixed)
    return out


# ----------------------------------------------------------------------------
# parameters (deterministic synthetic init; weights in kernel-friendly layouts:
# y = x @ W + b; concat-input Linears stored fused and split at prep time)
# ----------------------------------------------------------------------------
def init_params(key, *, D, A, V, V1, img_dim=2048):
    ks = iter(jax.random.split(key, 64))

    def u(shape, s=0.1):
        return jax.random.uniform(next(ks), shape, F32, -s, s)

    p = {}
    p['emb'] = u((V, D))          # self.embedding
    p['emb1'] = u((V1, D))        # self.embedding1
    # bidirectional nn.LSTM(D, D): per-direction weights, b_ih + b_hh folded
    p['lstm_wif'] = u((D, 4 * D)); p['lstm_whf'] = u((D, 4 * D)); p['lstm_bf'] = u((1, 4 * D))
    p['lstm_wib'] = u((D, 4 * D)); p['lstm_whb'] = u((D, 4 * D)); p['lstm_bb'] = u((1, 4 * D))
    # f4, f8: Linear(2D -> D)
    p['f4_w'] = u((2 * D, D)); p['f4_b'] = u((1, D))
    p['f8_w'] = u((2 * D, D)); p['f8_b'] = u((1, D))
    # image: Linear(2048 -> D)
    p['img_w'] = u((img_dim, D)); p['img_b'] = u((1, D))
    # attention1 / attention2
    for n in ('att1', 'att2'):
        p[n + '_wea'] = u((D, A)); p[n + '_bea'] = u((1, A))
        p[n + '_wda'] = u((D, A)); p[n + '_bda'] = u((1, A))
        p[n + '_wfa'] = u((1, A)); p[n + '_bfa'] = u((1, 1))
    # decode_step LSTMCell(2D -> D): fused input weight over [awa | emb]
    p['cell_wi'] = u((2 * D, 4 * D)); p['cell_wh'] = u((D, 4 * D)); p['cell_b'] = u((1, 4 * D))
    # f1, f2, fc1: Linear(2D -> D) fused over the concat input
    for n in ('f1', 'f2', 'fc1'):
        p[n + '_w'] = u((2 * D, D)); p[n + '_b'] = u((1, D))
    # fc: Linear(D -> V) (bias zero per init_weights)
    p['fc_w'] = u((D, V)); p['fc_b'] = jnp.zeros((1, V), F32)
    # p: Linear(3D -> 1) fused over [emb | gc | h1]
    p['p_w'] = u((3 * D, 1)); p['p_b'] = u((1, 1))
    return p


def prepare_kernel_params(p, D, V, Vp):
    kp = {}
    # BiLSTM per-direction weights (bf16 MXU operands, f32 biases)
    kp['lstm_wif'] = p['lstm_wif'].astype(BF16)
    kp['lstm_whf'] = p['lstm_whf'].astype(BF16)
    kp['lstm_bf'] = p['lstm_bf']
    kp['lstm_wib'] = p['lstm_wib'].astype(BF16)
    kp['lstm_whb'] = p['lstm_whb'].astype(BF16)
    kp['lstm_bb'] = p['lstm_bb']
    for n in ('att1', 'att2'):
        kp[n + '_wda'] = p[n + '_wda'].astype(BF16)
        kp[n + '_bda'] = p[n + '_bda']
        kp[n + '_wfa'] = p[n + '_wfa']
        kp[n + '_bfa'] = p[n + '_bfa']
    # LSTMCell on cat([awa, emb]): split fused input weight (no in-kernel concat)
    kp['cell_wa'] = p['cell_wi'][:D].astype(BF16)
    kp['cell_we'] = p['cell_wi'][D:].astype(BF16)
    kp['cell_wh'] = p['cell_wh'].astype(BF16)
    kp['cell_b'] = p['cell_b']
    # f1/f2 on cat([h1, prev]) and fc1 on cat([gc, h1]): split weights
    for n in ('f1', 'f2', 'fc1'):
        kp[n + '_wa'] = p[n + '_w'][:D].astype(BF16)
        kp[n + '_wb'] = p[n + '_w'][D:].astype(BF16)
        kp[n + '_b'] = p[n + '_b']
    # fc padded to lane-dense vocab: padded logits get -1e9 bias so their exp()
    # underflows to 0 and real-column log-softmax is unchanged.
    pad = Vp - V
    kp['fc_w'] = jnp.pad(p['fc_w'], ((0, 0), (0, pad))).astype(BF16)
    kp['fc_b'] = jnp.pad(p['fc_b'], ((0, 0), (0, pad)), constant_values=-1e9)
    # pointer gate on cat([emb, gc, h1]): split
    kp['p_wa'] = p['p_w'][:D].astype(BF16)
    kp['p_wb'] = p['p_w'][D:2 * D].astype(BF16)
    kp['p_wc'] = p['p_w'][2 * D:].astype(BF16)
    kp['p_b'] = p['p_b']
    # fused f4|f8 projection (single pass over hid_lstm, lane-dense N=2D)
    kp['f48_w'] = jnp.concatenate([p['f4_w'], p['f8_w']], axis=1)
    kp['f48_b'] = jnp.concatenate([p['f4_b'], p['f8_b']], axis=1)
    return kp


# ----------------------------------------------------------------------------
# full forward (glue in plain JAX, hot paths in Pallas)
# ----------------------------------------------------------------------------
def attn_decoder_forward(params, encoder_out, encoded_captions, caption_lengths,
                         encoded_articles, article_lengths, mask):
    del article_lengths  # unused by the torch forward as well
    B = encoder_out.shape[0]
    Bp = _round_up(B, 8)          # full-sublane batch => unmasked stores
    enc_feat_dim = encoder_out.shape[-1]
    D = params['emb'].shape[1]
    A = params['att1_wea'].shape[1]
    V = params['fc_w'].shape[1]
    Vp = _round_up(V, 256)        # 256-granular for the wider v6e/v7x MXU

    kp = prepare_kernel_params(params, D, V, Vp)

    pad_b = Bp - B

    def padb(a):
        if pad_b == 0:
            return a
        return jnp.pad(a, ((0, pad_b),) + ((0, 0),) * (a.ndim - 1))

    enc = padb(encoder_out).reshape(Bp, -1, enc_feat_dim)          # (Bp, P, 2048)
    P = enc.shape[1]
    arts = padb(encoded_articles)                                  # (Bp, Ta)
    caps = padb(encoded_captions)                                  # (Bp, Tc)
    mask_p = padb(mask.astype(F32))                                # (Bp, Ta)
    Ta = arts.shape[1]

    # article embeddings -> bidirectional LSTM (Pallas, time-major, bf16 I/O)
    emb_art = params['emb1'][arts]                                 # (Bp, Ta, D)
    x_tm = jnp.transpose(emb_art, (1, 0, 2)).astype(BF16)          # (Ta, Bp, D)
    out_f, out_b = bilstm(x_tm, kp['lstm_wif'], kp['lstm_whf'], kp['lstm_bf'],
                          kp['lstm_wib'], kp['lstm_whb'], kp['lstm_bb'])
    hid_lstm = jnp.transpose(jnp.concatenate([out_f, out_b], axis=-1), (1, 0, 2))
    # (Bp, Ta, 2D) bf16

    # fused f4|f8 projection and image projection (tiled Pallas linear + ReLU)
    h48 = linear(hid_lstm.reshape(Bp * Ta, 2 * D), kp['f48_w'], kp['f48_b'], relu=True)
    hiddens1 = h48[:, :D].reshape(Bp, Ta, D)
    hiddens2 = h48[:, D:].reshape(Bp, Ta, D)
    encoder_out1 = linear(enc.reshape(Bp * P, enc_feat_dim), params['img_w'],
                          params['img_b'], relu=True).reshape(Bp, P, D)
    hiddens = jnp.concatenate([hiddens1, encoder_out1], axis=1)    # (Bp, L1, D)
    L1 = hiddens.shape[1]

    # hoisted (time-invariant) encoder-side attention projections
    proj1 = linear(hiddens.reshape(Bp * L1, D), params['att1_wea'],
                   params['att1_bea']).reshape(Bp, L1, A)
    proj2 = linear(hiddens2.reshape(Bp * Ta, D), params['att2_wea'],
                   params['att2_bea']).reshape(Bp, Ta, A)
    addmask = jnp.where(mask_p == 0.0, -1e9, 0.0).astype(F32)      # (Bp, Ta)

    # caption embeddings / decode lengths
    emb_cap = params['emb'][caps]                                  # (Bp, Tc, D)
    decode_lengths = [int(l) - 1 for l in caption_lengths]
    Tdec = max(decode_lengths)
    K = 8
    Tp = _round_up(Tdec, K)
    emb_bm = jnp.pad(emb_cap[:, :Tdec, :].astype(F32),
                     ((0, 0), (0, Tp - Tdec), (0, 0)))             # (Bp, Tp, D)
    emb_tm = jnp.transpose(emb_bm, (1, 0, 2))                      # (Tp, Bp, D)

    # recurrent decoder: emits dist2 / gc / h1 per step (vocab head hoisted)
    dist2_tm, gc_tm, h1_tm = decoder_loop(
        kp, proj1, proj2, hiddens.astype(BF16), hiddens2.astype(BF16),
        addmask, emb_tm, K=K)

    # hoisted vocab head over all (Bp, Tp) rows at once (parallel grid)
    declen = jnp.array(decode_lengths + [0] * pad_b, jnp.int32)    # (Bp,)
    valid = (jnp.arange(Tp, dtype=jnp.int32)[None, :] < declen[:, None])
    valid = valid.astype(F32)[:, :, None]                          # (Bp, Tp, 1)
    # copy-mechanism one-hot kept f32 so the scatter_add equivalent matches
    # the torch f32 accumulation exactly.
    onehot = jax.nn.one_hot(arts, Vp, dtype=F32)                   # (Bp, Ta, Vp)
    preds_bm = vocab_head(kp,
                          jnp.transpose(gc_tm, (1, 0, 2)),
                          jnp.transpose(h1_tm, (1, 0, 2)),
                          emb_bm,
                          jnp.transpose(dist2_tm, (1, 0, 2)),
                          valid, onehot, Vp)                       # (Bp, Tp, Vp)

    predictions = preds_bm[:B, :Tdec, :V]
    # alphas / betas are allocated but never written in the torch forward
    alphas = jnp.zeros((B, Tdec, P), F32)
    betas = jnp.zeros((B, Tdec, 180), F32)
    return predictions, encoded_captions, decode_lengths, alphas, betas


# ----------------------------------------------------------------------------
if __name__ == "__main__":
    B, Hs, Ws, Fimg = 2, 2, 2, 2048
    D, A, V, V1, Ta, Tc = 32, 16, 50, 60, 6, 5

    key = jax.random.PRNGKey(0)
    kkey, k1, k2, k3 = jax.random.split(key, 4)
    params = init_params(kkey, D=D, A=A, V=V, V1=V1, img_dim=Fimg)

    encoder_out = jax.random.normal(k1, (B, Hs, Ws, Fimg), F32)
    encoded_captions = jax.random.randint(k2, (B, Tc), 0, V, jnp.int32)
    # article token ids kept < vocab_size so the scatter_add copy-mech is valid
    encoded_articles = jax.random.randint(k3, (B, Ta), 0, min(V, V1), jnp.int32)
    caption_lengths = [5, 4]          # sorted descending, as the torch code assumes
    article_lengths = [6, 4]
    mask = jnp.array([[1, 1, 1, 1, 1, 0],
                      [1, 1, 1, 0, 0, 0]], F32)

    preds, caps, dlens, alphas, betas = attn_decoder_forward(
        params, encoder_out, encoded_captions, caption_lengths,
        encoded_articles, article_lengths, mask)
    jax.block_until_ready(preds)

    assert preds.shape == (B, max(dlens), V)
    assert alphas.shape == (B, max(dlens), Hs * Ws)
    assert betas.shape == (B, max(dlens), 180)
    assert bool(jnp.all(jnp.isfinite(preds)))
    print("KERNEL_OK")
</pallas_src>

<mosaic_0001>
module attributes {stable_mosaic.version = 11 : i64} {
  func.func @kernel(%arg0: i32, %arg1: memref<6x8x32xbf16, #tpu.memory_space<vmem>>, %arg2: memref<6x8x32xbf16, #tpu.memory_space<vmem>>, %arg3: memref<32x128xbf16, #tpu.memory_space<vmem>>, %arg4: memref<32x128xbf16, #tpu.memory_space<vmem>>, %arg5: memref<1x128xf32, #tpu.memory_space<vmem>>, %arg6: memref<32x128xbf16, #tpu.memory_space<vmem>>, %arg7: memref<32x128xbf16, #tpu.memory_space<vmem>>, %arg8: memref<1x128xf32, #tpu.memory_space<vmem>>, %arg9: memref<6x8x32xbf16, #tpu.memory_space<vmem>>, %arg10: memref<6x8x32xbf16, #tpu.memory_space<vmem>>, %arg11: memref<8x32xf32, #tpu.memory_space<vmem>>, %arg12: memref<8x32xf32, #tpu.memory_space<vmem>>, %arg13: memref<8x32xf32, #tpu.memory_space<vmem>>, %arg14: memref<8x32xf32, #tpu.memory_space<vmem>>) attributes {dimension_semantics = [#tpu.dimension_semantics<arbitrary>], iteration_bounds = array<i64: 1>, scalar_prefetch = 0 : i64, scratch_operands = 4 : i64, tpu.core_type = #tpu.core_type<tc>, window_params = [{transform_indices = @transform_0, window_bounds = array<i64: 6, 8, 32>}, {transform_indices = @transform_1, window_bounds = array<i64: 6, 8, 32>}, {pipeline_mode = #tpu.pipeline_mode<synchronous>, transform_indices = @transform_2, window_bounds = array<i64: 32, 128>}, {pipeline_mode = #tpu.pipeline_mode<synchronous>, transform_indices = @transform_3, window_bounds = array<i64: 32, 128>}, {pipeline_mode = #tpu.pipeline_mode<synchronous>, transform_indices = @transform_4, window_bounds = array<i64: 1, 128>}, {pipeline_mode = #tpu.pipeline_mode<synchronous>, transform_indices = @transform_5, window_bounds = array<i64: 32, 128>}, {pipeline_mode = #tpu.pipeline_mode<synchronous>, transform_indices = @transform_6, window_bounds = array<i64: 32, 128>}, {pipeline_mode = #tpu.pipeline_mode<synchronous>, transform_indices = @transform_7, window_bounds = array<i64: 1, 128>}, {transform_indices = @transform_8, window_bounds = array<i64: 6, 8, 32>}, {transform_indices = @transform_9, window_bounds = array<i64: 6, 8, 32>}]} {
    %c0_i32 = arith.constant 0 : i32
    %0 = arith.cmpi eq, %arg0, %c0_i32 : i32
    %1 = arith.extui %0 : i1 to i32
    %c0_i32_0 = arith.constant 0 : i32
    %2 = arith.cmpi ne, %1, %c0_i32_0 : i32
    scf.if %2 {
      %cst_136 = arith.constant 0.000000e+00 : f32
      %485 = vector.broadcast %cst_136 : f32 to vector<8x32xf32>
      %c0_137 = arith.constant 0 : index
      %c0_138 = arith.constant 0 : index
      %486 = vector.load %arg11[%c0_137, %c0_138] : memref<8x32xf32, #tpu.memory_space<vmem>>, vector<8x32xf32>
      tpu.vector_store %arg11[%c0_137, %c0_138], %485 {strides = array<i32>} : memref<8x32xf32, #tpu.memory_space<vmem>>, vector<8x32xf32>,
      %cst_139 = arith.constant 0.000000e+00 : f32
      %487 = vector.broadcast %cst_139 : f32 to vector<8x32xf32>
      %c0_140 = arith.constant 0 : index
      %c0_141 = arith.constant 0 : index
      %488 = vector.load %arg12[%c0_140, %c0_141] : memref<8x32xf32, #tpu.memory_space<vmem>>, vector<8x32xf32>
      tpu.vector_store %arg12[%c0_140, %c0_141], %487 {strides = array<i32>} : memref<8x32xf32, #tpu.memory_space<vmem>>, vector<8x32xf32>,
      %cst_142 = arith.constant 0.000000e+00 : f32
      %489 = vector.broadcast %cst_142 : f32 to vector<8x32xf32>
      %c0_143 = arith.constant 0 : index
      %c0_144 = arith.constant 0 : index
      %490 = vector.load %arg13[%c0_143, %c0_144] : memref<8x32xf32, #tpu.memory_space<vmem>>, vector<8x32xf32>
      tpu.vector_store %arg13[%c0_143, %c0_144], %489 {strides = array<i32>} : memref<8x32xf32, #tpu.memory_space<vmem>>, vector<8x32xf32>,
      %cst_145 = arith.constant 0.000000e+00 : f32
      %491 = vector.broadcast %cst_145 : f32 to vector<8x32xf32>
      %c0_146 = arith.constant 0 : index
      %c0_147 = arith.constant 0 : index
      %492 = vector.load %arg14[%c0_146, %c0_147] : memref<8x32xf32, #tpu.memory_space<vmem>>, vector<8x32xf32>
      tpu.vector_store %arg14[%c0_146, %c0_147], %491 {strides = array<i32>} : memref<8x32xf32, #tpu.memory_space<vmem>>, vector<8x32xf32>,
    } else {
    }
    %c0 = arith.constant 0 : index
    %c0_1 = arith.constant 0 : index
    %3 = vector.load %arg3[%c0, %c0_1] : memref<32x128xbf16, #tpu.memory_space<vmem>>, vector<32x128xbf16>
    %c0_2 = arith.constant 0 : index
    %c0_3 = arith.constant 0 : index
    %4 = vector.load %arg4[%c0_2, %c0_3] : memref<32x128xbf16, #tpu.memory_space<vmem>>, vector<32x128xbf16>
    %c0_4 = arith.constant 0 : index
    %c0_5 = arith.constant 0 : index
    %5 = vector.load %arg5[%c0_4, %c0_5] : memref<1x128xf32, #tpu.memory_space<vmem>>, vector<1x128xf32>
    %c0_6 = arith.constant 0 : index
    %c0_7 = arith.constant 0 : index
    %6 = vector.load %arg6[%c0_6, %c0_7] : memref<32x128xbf16, #tpu.memory_space<vmem>>, vector<32x128xbf16>
    %c0_8 = arith.constant 0 : index
    %c0_9 = arith.constant 0 : index
    %7 = vector.load %arg7[%c0_8, %c0_9] : memref<32x128xbf16, #tpu.memory_space<vmem>>, vector<32x128xbf16>
    %c0_10 = arith.constant 0 : index
    %c0_11 = arith.constant 0 : index
    %8 = vector.load %arg8[%c0_10, %c0_11] : memref<1x128xf32, #tpu.memory_space<vmem>>, vector<1x128xf32>
    %c0_12 = arith.constant 0 : index
    %c0_13 = arith.constant 0 : index
    %9 = vector.load %arg11[%c0_12, %c0_13] : memref<8x32xf32, #tpu.memory_space<vmem>>, vector<8x32xf32>
    %c0_14 = arith.constant 0 : index
    %c0_15 = arith.constant 0 : index
    %10 = vector.load %arg12[%c0_14, %c0_15] : memref<8x32xf32, #tpu.memory_space<vmem>>, vector<8x32xf32>
    %c0_16 = arith.constant 0 : index
    %c0_17 = arith.constant 0 : index
    %11 = vector.load %arg13[%c0_16, %c0_17] : memref<8x32xf32, #tpu.memory_space<vmem>>, vector<8x32xf32>
    %c0_18 = arith.constant 0 : index
    %c0_19 = arith.constant 0 : index
    %12 = vector.load %arg14[%c0_18, %c0_19] : memref<8x32xf32, #tpu.memory_space<vmem>>, vector<8x32xf32>
    %c0_i32_20 = arith.constant 0 : i32
    %13 = arith.index_cast %c0_i32_20 : i32 to index
    %c0_21 = arith.constant 0 : index
    %c0_22 = arith.constant 0 : index
    %14 = vector.load %arg1[%13, %c0_21, %c0_22] : memref<6x8x32xbf16, #tpu.memory_space<vmem>>, vector<1x8x32xbf16>
    %15 = vector.shape_cast %14 : vector<1x8x32xbf16> to vector<8x32xbf16>
    %cst = arith.constant dense<0.000000e+00> : vector<8x128xf32>
    %16 = tpu.matmul %15, %3, %cst {dimension_numbers = #tpu.dot_dimension_numbers<[1], [0], [0], [1], [0, 0, 1, 1], [], []>} : vector<8x32xbf16>, vector<32x128xbf16>, vector<8x128xf32> -> vector<8x128xf32>
    %17 = arith.truncf %9 : vector<8x32xf32> to vector<8x32xbf16>
    %cst_23 = arith.constant dense<0.000000e+00> : vector<8x128xf32>
    %18 = tpu.matmul %17, %4, %cst_23 {dimension_numbers = #tpu.dot_dimension_numbers<[1], [0], [0], [1], [0, 0, 1, 1], [], []>} : vector<8x32xbf16>, vector<32x128xbf16>, vector<8x128xf32> -> vector<8x128xf32>
    %19 = arith.addf %16, %18 : vector<8x128xf32>
    %20 = vector.broadcast %5 : vector<1x128xf32> to vector<8x128xf32>
    %21 = arith.addf %19, %20 : vector<8x128xf32>
    %22 = vector.extract_strided_slice %21 {offsets = [0, 0], sizes = [8, 32], strides = [1, 1]} : vector<8x128xf32> to vector<8x32xf32>
    %23 = arith.negf %22 : vector<8x32xf32>
    %24 = math.exp %23 : vector<8x32xf32>
    %cst_24 = arith.constant 1.000000e+00 : f32
    %25 = vector.broadcast %cst_24 : f32 to vector<8x32xf32>
    %26 = arith.addf %25, %24 : vector<8x32xf32>
    %27 = arith.divf %25, %26 : vector<8x32xf32>
    %28 = vector.extract_strided_slice %21 {offsets = [0, 32], sizes = [8, 32], strides = [1, 1]} : vector<8x128xf32> to vector<8x32xf32>
    %29 = arith.negf %28 : vector<8x32xf32>
    %30 = math.exp %29 : vector<8x32xf32>
    %cst_25 = arith.constant 1.000000e+00 : f32
    %31 = vector.broadcast %cst_25 : f32 to vector<8x32xf32>
    %32 = arith.addf %31, %30 : vector<8x32xf32>
    %33 = arith.divf %31, %32 : vector<8x32xf32>
    %34 = vector.extract_strided_slice %21 {offsets = [0, 64], sizes = [8, 32], strides = [1, 1]} : vector<8x128xf32> to vector<8x32xf32>
    %35 = math.tanh %34 : vector<8x32xf32>
    %36 = vector.extract_strided_slice %21 {offsets = [0, 96], sizes = [8, 32], strides = [1, 1]} : vector<8x128xf32> to vector<8x32xf32>
    %37 = arith.negf %36 : vector<8x32xf32>
    %38 = math.exp %37 : vector<8x32xf32>
    %cst_26 = arith.constant 1.000000e+00 : f32
    %39 = vector.broadcast %cst_26 : f32 to vector<8x32xf32>
    %40 = arith.addf %39, %38 : vector<8x32xf32>
    %41 = arith.divf %39, %40 : vector<8x32xf32>
    %42 = arith.mulf %33, %10 : vector<8x32xf32>
    %43 = arith.mulf %27, %35 : vector<8x32xf32>
    %44 = arith.addf %42, %43 : vector<8x32xf32>
    %45 = math.tanh %44 : vector<8x32xf32>
    %46 = arith.mulf %41, %45 : vector<8x32xf32>
    %47 = arith.index_cast %c0_i32_20 : i32 to index
    %c0_27 = arith.constant 0 : index
    %c0_28 = arith.constant 0 : index
    %48 = vector.load %arg2[%47, %c0_27, %c0_28] : memref<6x8x32xbf16, #tpu.memory_space<vmem>>, vector<1x8x32xbf16>
    %49 = vector.shape_cast %48 : vector<1x8x32xbf16> to vector<8x32xbf16>
    %cst_29 = arith.constant dense<0.000000e+00> : vector<8x128xf32>
    %50 = tpu.matmul %49, %6, %cst_29 {dimension_numbers = #tpu.dot_dimension_numbers<[1], [0], [0], [1], [0, 0, 1, 1], [], []>} : vector<8x32xbf16>, vector<32x128xbf16>, vector<8x128xf32> -> vector<8x128xf32>
    %51 = arith.truncf %11 : vector<8x32xf32> to vector<8x32xbf16>
    %cst_30 = arith.constant dense<0.000000e+00> : vector<8x128xf32>
    %52 = tpu.matmul %51, %7, %cst_30 {dimension_numbers = #tpu.dot_dimension_numbers<[1], [0], [0], [1], [0, 0, 1, 1], [], []>} : vector<8x32xbf16>, vector<32x128xbf16>, vector<8x128xf32> -> vector<8x128xf32>
    %53 = arith.addf %50, %52 : vector<8x128xf32>
    %54 = vector.broadcast %8 : vector<1x128xf32> to vector<8x128xf32>
    %55 = arith.addf %53, %54 : vector<8x128xf32>
    %56 = vector.extract_strided_slice %55 {offsets = [0, 0], sizes = [8, 32], strides = [1, 1]} : vector<8x128xf32> to vector<8x32xf32>
    %57 = arith.negf %56 : vector<8x32xf32>
    %58 = math.exp %57 : vector<8x32xf32>
    %cst_31 = arith.constant 1.000000e+00 : f32
    %59 = vector.broadcast %cst_31 : f32 to vector<8x32xf32>
    %60 = arith.addf %59, %58 : vector<8x32xf32>
    %61 = arith.divf %59, %60 : vector<8x32xf32>
    %62 = vector.extract_strided_slice %55 {offsets = [0, 32], sizes = [8, 32], strides = [1, 1]} : vector<8x128xf32> to vector<8x32xf32>
    %63 = arith.negf %62 : vector<8x32xf32>
    %64 = math.exp %63 : vector<8x32xf32>
    %cst_32 = arith.constant 1.000000e+00 : f32
    %65 = vector.broadcast %cst_32 : f32 to vector<8x32xf32>
    %66 = arith.addf %65, %64 : vector<8x32xf32>
    %67 = arith.divf %65, %66 : vector<8x32xf32>
    %68 = vector.extract_strided_slice %55 {offsets = [0, 64], sizes = [8, 32], strides = [1, 1]} : vector<8x128xf32> to vector<8x32xf32>
    %69 = math.tanh %68 : vector<8x32xf32>
    %70 = vector.extract_strided_slice %55 {offsets = [0, 96], sizes = [8, 32], strides = [1, 1]} : vector<8x128xf32> to vector<8x32xf32>
    %71 = arith.negf %70 : vector<8x32xf32>
    %72 = math.exp %71 : vector<8x32xf32>
    %cst_33 = arith.constant 1.000000e+00 : f32
    %73 = vector.broadcast %cst_33 : f32 to vector<8x32xf32>
    %74 = arith.addf %73, %72 : vector<8x32xf32>
    %75 = arith.divf %73, %74 : vector<8x32xf32>
    %76 = arith.mulf %67, %12 : vector<8x32xf32>
    %77 = arith.mulf %61, %69 : vector<8x32xf32>
    %78 = arith.addf %76, %77 : vector<8x32xf32>
    %79 = math.tanh %78 : vector<8x32xf32>
    %80 = arith.mulf %75, %79 : vector<8x32xf32>
    %81 = arith.truncf %46 : vector<8x32xf32> to vector<8x32xbf16>
    %82 = arith.index_cast %c0_i32_20 : i32 to index
    %c0_34 = arith.constant 0 : index
    %c0_35 = arith.constant 0 : index
    %83 = vector.load %arg9[%82, %c0_34, %c0_35] : memref<6x8x32xbf16, #tpu.memory_space<vmem>>, vector<1x8x32xbf16>
    %84 = vector.shape_cast %83 : vector<1x8x32xbf16> to vector<8x32xbf16>
    %85 = vector.shape_cast %81 : vector<8x32xbf16> to vector<1x8x32xbf16>
    tpu.vector_store %arg9[%82, %c0_34, %c0_35], %85 {strides = array<i32>} : memref<6x8x32xbf16, #tpu.memory_space<vmem>>, vector<1x8x32xbf16>,
    %86 = arith.truncf %80 : vector<8x32xf32> to vector<8x32xbf16>
    %87 = arith.index_cast %c0_i32_20 : i32 to index
    %c0_36 = arith.constant 0 : index
    %c0_37 = arith.constant 0 : index
    %88 = vector.load %arg10[%87, %c0_36, %c0_37] : memref<6x8x32xbf16, #tpu.memory_space<vmem>>, vector<1x8x32xbf16>
    %89 = vector.shape_cast %88 : vector<1x8x32xbf16> to vector<8x32xbf16>
    %90 = vector.shape_cast %86 : vector<8x32xbf16> to vector<1x8x32xbf16>
    tpu.vector_store %arg10[%87, %c0_36, %c0_37], %90 {strides = array<i32>} : memref<6x8x32xbf16, #tpu.memory_space<vmem>>, vector<1x8x32xbf16>,
    %c1_i32 = arith.constant 1 : i32
    %91 = arith.index_cast %c1_i32 : i32 to index
    %c0_38 = arith.constant 0 : index
    %c0_39 = arith.constant 0 : index
    %92 = vector.load %arg1[%91, %c0_38, %c0_39] : memref<6x8x32xbf16, #tpu.memory_space<vmem>>, vector<1x8x32xbf16>
    %93 = vector.shape_cast %92 : vector<1x8x32xbf16> to vector<8x32xbf16>
    %cst_40 = arith.constant dense<0.000000e+00> : vector<8x128xf32>
    %94 = tpu.matmul %93, %3, %cst_40 {dimension_numbers = #tpu.dot_dimension_numbers<[1], [0], [0], [1], [0, 0, 1, 1], [], []>} : vector<8x32xbf16>, vector<32x128xbf16>, vector<8x128xf32> -> vector<8x128xf32>
    %95 = arith.truncf %46 : vector<8x32xf32> to vector<8x32xbf16>
    %cst_41 = arith.constant dense<0.000000e+00> : vector<8x128xf32>
    %96 = tpu.matmul %95, %4, %cst_41 {dimension_numbers = #tpu.dot_dimension_numbers<[1], [0], [0], [1], [0, 0, 1, 1], [], []>} : vector<8x32xbf16>, vector<32x128xbf16>, vector<8x128xf32> -> vector<8x128xf32>
    %97 = arith.addf %94, %96 : vector<8x128xf32>
    %98 = vector.broadcast %5 : vector<1x128xf32> to vector<8x128xf32>
    %99 = arith.addf %97, %98 : vector<8x128xf32>
    %100 = vector.extract_strided_slice %99 {offsets = [0, 0], sizes = [8, 32], strides = [1, 1]} : vector<8x128xf32> to vector<8x32xf32>
    %101 = arith.negf %100 : vector<8x32xf32>
    %102 = math.exp %101 : vector<8x32xf32>
    %cst_42 = arith.constant 1.000000e+00 : f32
    %103 = vector.broadcast %cst_42 : f32 to vector<8x32xf32>
    %104 = arith.addf %103, %102 : vector<8x32xf32>
    %105 = arith.divf %103, %104 : vector<8x32xf32>
    %106 = vector.extract_strided_slice %99 {offsets = [0, 32], sizes = [8, 32], strides = [1, 1]} : vector<8x128xf32> to vector<8x32xf32>
    %107 = arith.negf %106 : vector<8x32xf32>
    %108 = math.exp %107 : vector<8x32xf32>
    %cst_43 = arith.constant 1.000000e+00 : f32
    %109 = vector.broadcast %cst_43 : f32 to vector<8x32xf32>
    %110 = arith.addf %109, %108 : vector<8x32xf32>
    %111 = arith.divf %109, %110 : vector<8x32xf32>
    %112 = vector.extract_strided_slice %99 {offsets = [0, 64], sizes = [8, 32], strides = [1, 1]} : vector<8x128xf32> to vector<8x32xf32>
    %113 = math.tanh %112 : vector<8x32xf32>
    %114 = vector.extract_strided_slice %99 {offsets = [0, 96], sizes = [8, 32], strides = [1, 1]} : vector<8x128xf32> to vector<8x32xf32>
    %115 = arith.negf %114 : vector<8x32xf32>
    %116 = math.exp %115 : vector<8x32xf32>
    %cst_44 = arith.constant 1.000000e+00 : f32
    %117 = vector.broadcast %cst_44 : f32 to vector<8x32xf32>
    %118 = arith.addf %117, %116 : vector<8x32xf32>
    %119 = arith.divf %117, %118 : vector<8x32xf32>
    %120 = arith.mulf %111, %44 : vector<8x32xf32>
    %121 = arith.mulf %105, %113 : vector<8x32xf32>
    %122 = arith.addf %120, %121 : vector<8x32xf32>
    %123 = math.tanh %122 : vector<8x32xf32>
    %124 = arith.mulf %119, %123 : vector<8x32xf32>
    %125 = arith.index_cast %c1_i32 : i32 to index
    %c0_45 = arith.constant 0 : index
    %c0_46 = arith.constant 0 : index
    %126 = vector.load %arg2[%125, %c0_45, %c0_46] : memref<6x8x32xbf16, #tpu.memory_space<vmem>>, vector<1x8x32xbf16>
    %127 = vector.shape_cast %126 : vector<1x8x32xbf16> to vector<8x32xbf16>
    %cst_47 = arith.constant dense<0.000000e+00> : vector<8x128xf32>
    %128 = tpu.matmul %127, %6, %cst_47 {dimension_numbers = #tpu.dot_dimension_numbers<[1], [0], [0], [1], [0, 0, 1, 1], [], []>} : vector<8x32xbf16>, vector<32x128xbf16>, vector<8x128xf32> -> vector<8x128xf32>
    %129 = arith.truncf %80 : vector<8x32xf32> to vector<8x32xbf16>
    %cst_48 = arith.constant dense<0.000000e+00> : vector<8x128xf32>
    %130 = tpu.matmul %129, %7, %cst_48 {dimension_numbers = #tpu.dot_dimension_numbers<[1], [0], [0], [1], [0, 0, 1, 1], [], []>} : vector<8x32xbf16>, vector<32x128xbf16>, vector<8x128xf32> -> vector<8x128xf32>
    %131 = arith.addf %128, %130 : vector<8x128xf32>
    %132 = vector.broadcast %8 : vector<1x128xf32> to vector<8x128xf32>
    %133 = arith.addf %131, %132 : vector<8x128xf32>
    %134 = vector.extract_strided_slice %133 {offsets = [0, 0], sizes = [8, 32], strides = [1, 1]} : vector<8x128xf32> to vector<8x32xf32>
    %135 = arith.negf %134 : vector<8x32xf32>
    %136 = math.exp %135 : vector<8x32xf32>
    %cst_49 = arith.constant 1.000000e+00 : f32
    %137 = vector.broadcast %cst_49 : f32 to vector<8x32xf32>
    %138 = arith.addf %137, %136 : vector<8x32xf32>
    %139 = arith.divf %137, %138 : vector<8x32xf32>
    %140 = vector.extract_strided_slice %133 {offsets = [0, 32], sizes = [8, 32], strides = [1, 1]} : vector<8x128xf32> to vector<8x32xf32>
    %141 = arith.negf %140 : vector<8x32xf32>
    %142 = math.exp %141 : vector<8x32xf32>
    %cst_50 = arith.constant 1.000000e+00 : f32
    %143 = vector.broadcast %cst_50 : f32 to vector<8x32xf32>
    %144 = arith.addf %143, %142 : vector<8x32xf32>
    %145 = arith.divf %143, %144 : vector<8x32xf32>
    %146 = vector.extract_strided_slice %133 {offsets = [0, 64], sizes = [8, 32], strides = [1, 1]} : vector<8x128xf32> to vector<8x32xf32>
    %147 = math.tanh %146 : vector<8x32xf32>
    %148 = vector.extract_strided_slice %133 {offsets = [0, 96], sizes = [8, 32], strides = [1, 1]} : vector<8x128xf32> to vector<8x32xf32>
    %149 = arith.negf %148 : vector<8x32xf32>
    %150 = math.exp %149 : vector<8x32xf32>
    %cst_51 = arith.constant 1.000000e+00 : f32
    %151 = vector.broadcast %cst_51 : f32 to vector<8x32xf32>
    %152 = arith.addf %151, %150 : vector<8x32xf32>
    %153 = arith.divf %151, %152 : vector<8x32xf32>
    %154 = arith.mulf %145, %78 : vector<8x32xf32>
    %155 = arith.mulf %139, %147 : vector<8x32xf32>
    %156 = arith.addf %154, %155 : vector<8x32xf32>
    %157 = math.tanh %156 : vector<8x32xf32>
    %158 = arith.mulf %153, %157 : vector<8x32xf32>
    %159 = arith.truncf %124 : vector<8x32xf32> to vector<8x32xbf16>
    %160 = arith.index_cast %c1_i32 : i32 to index
    %c0_52 = arith.constant 0 : index
    %c0_53 = arith.constant 0 : index
    %161 = vector.load %arg9[%160, %c0_52, %c0_53] : memref<6x8x32xbf16, #tpu.memory_space<vmem>>, vector<1x8x32xbf16>
    %162 = vector.shape_cast %161 : vector<1x8x32xbf16> to vector<8x32xbf16>
    %163 = vector.shape_cast %159 : vector<8x32xbf16> to vector<1x8x32xbf16>
    tpu.vector_store %arg9[%160, %c0_52, %c0_53], %163 {strides = array<i32>} : memref<6x8x32xbf16, #tpu.memory_space<vmem>>, vector<1x8x32xbf16>,
    %164 = arith.truncf %158 : vector<8x32xf32> to vector<8x32xbf16>
    %165 = arith.index_cast %c1_i32 : i32 to index
    %c0_54 = arith.constant 0 : index
    %c0_55 = arith.constant 0 : index
    %166 = vector.load %arg10[%165, %c0_54, %c0_55] : memref<6x8x32xbf16, #tpu.memory_space<vmem>>, vector<1x8x32xbf16>
    %167 = vector.shape_cast %166 : vector<1x8x32xbf16> to vector<8x32xbf16>
    %168 = vector.shape_cast %164 : vector<8x32xbf16> to vector<1x8x32xbf16>
    tpu.vector_store %arg10[%165, %c0_54, %c0_55], %168 {strides = array<i32>} : memref<6x8x32xbf16, #tpu.memory_space<vmem>>, vector<1x8x32xbf16>,
    %c2_i32 = arith.constant 2 : i32
    %169 = arith.index_cast %c2_i32 : i32 to index
    %c0_56 = arith.constant 0 : index
    %c0_57 = arith.constant 0 : index
    %170 = vector.load %arg1[%169, %c0_56, %c0_57] : memref<6x8x32xbf16, #tpu.memory_space<vmem>>, vector<1x8x32xbf16>
    %171 = vector.shape_cast %170 : vector<1x8x32xbf16> to vector<8x32xbf16>
    %cst_58 = arith.constant dense<0.000000e+00> : vector<8x128xf32>
    %172 = tpu.matmul %171, %3, %cst_58 {dimension_numbers = #tpu.dot_dimension_numbers<[1], [0], [0], [1], [0, 0, 1, 1], [], []>} : vector<8x32xbf16>, vector<32x128xbf16>, vector<8x128xf32> -> vector<8x128xf32>
    %173 = arith.truncf %124 : vector<8x32xf32> to vector<8x32xbf16>
    %cst_59 = arith.constant dense<0.000000e+00> : vector<8x128xf32>
    %174 = tpu.matmul %173, %4, %cst_59 {dimension_numbers = #tpu.dot_dimension_numbers<[1], [0], [0], [1], [0, 0, 1, 1], [], []>} : vector<8x32xbf16>, vector<32x128xbf16>, vector<8x128xf32> -> vector<8x128xf32>
    %175 = arith.addf %172, %174 : vector<8x128xf32>
    %176 = vector.broadcast %5 : vector<1x128xf32> to vector<8x128xf32>
    %177 = arith.addf %175, %176 : vector<8x128xf32>
    %178 = vector.extract_strided_slice %177 {offsets = [0, 0], sizes = [8, 32], strides = [1, 1]} : vector<8x128xf32> to vector<8x32xf32>
    %179 = arith.negf %178 : vector<8x32xf32>
    %180 = math.exp %179 : vector<8x32xf32>
    %cst_60 = arith.constant 1.000000e+00 : f32
    %181 = vector.broadcast %cst_60 : f32 to vector<8x32xf32>
    %182 = arith.addf %181, %180 : vector<8x32xf32>
    %183 = arith.divf %181, %182 : vector<8x32xf32>
    %184 = vector.extract_strided_slice %177 {offsets = [0, 32], sizes = [8, 32], strides = [1, 1]} : vector<8x128xf32> to vector<8x32xf32>
    %185 = arith.negf %184 : vector<8x32xf32>
    %186 = math.exp %185 : vector<8x32xf32>
    %cst_61 = arith.constant 1.000000e+00 : f32
    %187 = vector.broadcast %cst_61 : f32 to vector<8x32xf32>
    %188 = arith.addf %187, %186 : vector<8x32xf32>
    %189 = arith.divf %187, %188 : vector<8x32xf32>
    %190 = vector.extract_strided_slice %177 {offsets = [0, 64], sizes = [8, 32], strides = [1, 1]} : vector<8x128xf32> to vector<8x32xf32>
    %191 = math.tanh %190 : vector<8x32xf32>
    %192 = vector.extract_strided_slice %177 {offsets = [0, 96], sizes = [8, 32], strides = [1, 1]} : vector<8x128xf32> to vector<8x32xf32>
    %193 = arith.negf %192 : vector<8x32xf32>
    %194 = math.exp %193 : vector<8x32xf32>
    %cst_62 = arith.constant 1.000000e+00 : f32
    %195 = vector.broadcast %cst_62 : f32 to vector<8x32xf32>
    %196 = arith.addf %195, %194 : vector<8x32xf32>
    %197 = arith.divf %195, %196 : vector<8x32xf32>
    %198 = arith.mulf %189, %122 : vector<8x32xf32>
    %199 = arith.mulf %183, %191 : vector<8x32xf32>
    %200 = arith.addf %198, %199 : vector<8x32xf32>
    %201 = math.tanh %200 : vector<8x32xf32>
    %202 = arith.mulf %197, %201 : vector<8x32xf32>
    %203 = arith.index_cast %c2_i32 : i32 to index
    %c0_63 = arith.constant 0 : index
    %c0_64 = arith.constant 0 : index
    %204 = vector.load %arg2[%203, %c0_63, %c0_64] : memref<6x8x32xbf16, #tpu.memory_space<vmem>>, vector<1x8x32xbf16>
    %205 = vector.shape_cast %204 : vector<1x8x32xbf16> to vector<8x32xbf16>
    %cst_65 = arith.constant dense<0.000000e+00> : vector<8x128xf32>
    %206 = tpu.matmul %205, %6, %cst_65 {dimension_numbers = #tpu.dot_dimension_numbers<[1], [0], [0], [1], [0, 0, 1, 1], [], []>} : vector<8x32xbf16>, vector<32x128xbf16>, vector<8x128xf32> -> vector<8x128xf32>
    %207 = arith.truncf %158 : vector<8x32xf32> to vector<8x32xbf16>
    %cst_66 = arith.constant dense<0.000000e+00> : vector<8x128xf32>
    %208 = tpu.matmul %207, %7, %cst_66 {dimension_numbers = #tpu.dot_dimension_numbers<[1], [0], [0], [1], [0, 0, 1, 1], [], []>} : vector<8x32xbf16>, vector<32x128xbf16>, vector<8x128xf32> -> vector<8x128xf32>
    %209 = arith.addf %206, %208 : vector<8x128xf32>
    %210 = vector.broadcast %8 : vector<1x128xf32> to vector<8x128xf32>
    %211 = arith.addf %209, %210 : vector<8x128xf32>
    %212 = vector.extract_strided_slice %211 {offsets = [0, 0], sizes = [8, 32], strides = [1, 1]} : vector<8x128xf32> to vector<8x32xf32>
    %213 = arith.negf %212 : vector<8x32xf32>
    %214 = math.exp %213 : vector<8x32xf32>
    %cst_67 = arith.constant 1.000000e+00 : f32
    %215 = vector.broadcast %cst_67 : f32 to vector<8x32xf32>
    %216 = arith.addf %215, %214 : vector<8x32xf32>
    %217 = arith.divf %215, %216 : vector<8x32xf32>
    %218 = vector.extract_strided_slice %211 {offsets = [0, 32], sizes = [8, 32], strides = [1, 1]} : vector<8x128xf32> to vector<8x32xf32>
    %219 = arith.negf %218 : vector<8x32xf32>
    %220 = math.exp %219 : vector<8x32xf32>
    %cst_68 = arith.constant 1.000000e+00 : f32
    %221 = vector.broadcast %cst_68 : f32 to vector<8x32xf32>
    %222 = arith.addf %221, %220 : vector<8x32xf32>
    %223 = arith.divf %221, %222 : vector<8x32xf32>
    %224 = vector.extract_strided_slice %211 {offsets = [0, 64], sizes = [8, 32], strides = [1, 1]} : vector<8x128xf32> to vector<8x32xf32>
    %225 = math.tanh %224 : vector<8x32xf32>
    %226 = vector.extract_strided_slice %211 {offsets = [0, 96], sizes = [8, 32], strides = [1, 1]} : vector<8x128xf32> to vector<8x32xf32>
    %227 = arith.negf %226 : vector<8x32xf32>
    %228 = math.exp %227 : vector<8x32xf32>
    %cst_69 = arith.constant 1.000000e+00 : f32
    %229 = vector.broadcast %cst_69 : f32 to vector<8x32xf32>
    %230 = arith.addf %229, %228 : vector<8x32xf32>
    %231 = arith.divf %229, %230 : vector<8x32xf32>
    %232 = arith.mulf %223, %156 : vector<8x32xf32>
    %233 = arith.mulf %217, %225 : vector<8x32xf32>
    %234 = arith.addf %232, %233 : vector<8x32xf32>
    %235 = math.tanh %234 : vector<8x32xf32>
    %236 = arith.mulf %231, %235 : vector<8x32xf32>
    %237 = arith.truncf %202 : vector<8x32xf32> to vector<8x32xbf16>
    %238 = arith.index_cast %c2_i32 : i32 to index
    %c0_70 = arith.constant 0 : index
    %c0_71 = arith.constant 0 : index
    %239 = vector.load %arg9[%238, %c0_70, %c0_71] : memref<6x8x32xbf16, #tpu.memory_space<vmem>>, vector<1x8x32xbf16>
    %240 = vector.shape_cast %239 : vector<1x8x32xbf16> to vector<8x32xbf16>
    %241 = vector.shape_cast %237 : vector<8x32xbf16> to vector<1x8x32xbf16>
    tpu.vector_store %arg9[%238, %c0_70, %c0_71], %241 {strides = array<i32>} : memref<6x8x32xbf16, #tpu.memory_space<vmem>>, vector<1x8x32xbf16>,
    %242 = arith.truncf %236 : vector<8x32xf32> to vector<8x32xbf16>
    %243 = arith.index_cast %c2_i32 : i32 to index
    %c0_72 = arith.constant 0 : index
    %c0_73 = arith.constant 0 : index
    %244 = vector.load %arg10[%243, %c0_72, %c0_73] : memref<6x8x32xbf16, #tpu.memory_space<vmem>>, vector<1x8x32xbf16>
    %245 = vector.shape_cast %244 : vector<1x8x32xbf16> to vector<8x32xbf16>
    %246 = vector.shape_cast %242 : vector<8x32xbf16> to vector<1x8x32xbf16>
    tpu.vector_store %arg10[%243, %c0_72, %c0_73], %246 {strides = array<i32>} : memref<6x8x32xbf16, #tpu.memory_space<vmem>>, vector<1x8x32xbf16>,
    %c3_i32 = arith.constant 3 : i32
    %247 = arith.index_cast %c3_i32 : i32 to index
    %c0_74 = arith.constant 0 : index
    %c0_75 = arith.constant 0 : index
    %248 = vector.load %arg1[%247, %c0_74, %c0_75] : memref<6x8x32xbf16, #tpu.memory_space<vmem>>, vector<1x8x32xbf16>
    %249 = vector.shape_cast %248 : vector<1x8x32xbf16> to vector<8x32xbf16>
    %cst_76 = arith.constant dense<0.000000e+00> : vector<8x128xf32>
    %250 = tpu.matmul %249, %3, %cst_76 {dimension_numbers = #tpu.dot_dimension_numbers<[1], [0], [0], [1], [0, 0, 1, 1], [], []>} : vector<8x32xbf16>, vector<32x128xbf16>, vector<8x128xf32> -> vector<8x128xf32>
    %251 = arith.truncf %202 : vector<8x32xf32> to vector<8x32xbf16>
    %cst_77 = arith.constant dense<0.000000e+00> : vector<8x128xf32>
    %252 = tpu.matmul %251, %4, %cst_77 {dimension_numbers = #tpu.dot_dimension_numbers<[1], [0], [0], [1], [0, 0, 1, 1], [], []>} : vector<8x32xbf16>, vector<32x128xbf16>, vector<8x128xf32> -> vector<8x128xf32>
    %253 = arith.addf %250, %252 : vector<8x128xf32>
    %254 = vector.broadcast %5 : vector<1x128xf32> to vector<8x128xf32>
    %255 = arith.addf %253, %254 : vector<8x128xf32>
    %256 = vector.extract_strided_slice %255 {offsets = [0, 0], sizes = [8, 32], strides = [1, 1]} : vector<8x128xf32> to vector<8x32xf32>
    %257 = arith.negf %256 : vector<8x32xf32>
    %258 = math.exp %257 : vector<8x32xf32>
    %cst_78 = arith.constant 1.000000e+00 : f32
    %259 = vector.broadcast %cst_78 : f32 to vector<8x32xf32>
    %260 = arith.addf %259, %258 : vector<8x32xf32>
    %261 = arith.divf %259, %260 : vector<8x32xf32>
    %262 = vector.extract_strided_slice %255 {offsets = [0, 32], sizes = [8, 32], strides = [1, 1]} : vector<8x128xf32> to vector<8x32xf32>
    %263 = arith.negf %262 : vector<8x32xf32>
    %264 = math.exp %263 : vector<8x32xf32>
    %cst_79 = arith.constant 1.000000e+00 : f32
    %265 = vector.broadcast %cst_79 : f32 to vector<8x32xf32>
    %266 = arith.addf %265, %264 : vector<8x32xf32>
    %267 = arith.divf %265, %266 : vector<8x32xf32>
    %268 = vector.extract_strided_slice %255 {offsets = [0, 64], sizes = [8, 32], strides = [1, 1]} : vector<8x128xf32> to vector<8x32xf32>
    %269 = math.tanh %268 : vector<8x32xf32>
    %270 = vector.extract_strided_slice %255 {offsets = [0, 96], sizes = [8, 32], strides = [1, 1]} : vector<8x128xf32> to vector<8x32xf32>
    %271 = arith.negf %270 : vector<8x32xf32>
    %272 = math.exp %271 : vector<8x32xf32>
    %cst_80 = arith.constant 1.000000e+00 : f32
    %273 = vector.broadcast %cst_80 : f32 to vector<8x32xf32>
    %274 = arith.addf %273, %272 : vector<8x32xf32>
    %275 = arith.divf %273, %274 : vector<8x32xf32>
    %276 = arith.mulf %267, %200 : vector<8x32xf32>
    %277 = arith.mulf %261, %269 : vector<8x32xf32>
    %278 = arith.addf %276, %277 : vector<8x32xf32>
    %279 = math.tanh %278 : vector<8x32xf32>
    %280 = arith.mulf %275, %279 : vector<8x32xf32>
    %281 = arith.index_cast %c3_i32 : i32 to index
    %c0_81 = arith.constant 0 : index
    %c0_82 = arith.constant 0 : index
    %282 = vector.load %arg2[%281, %c0_81, %c0_82] : memref<6x8x32xbf16, #tpu.memory_space<vmem>>, vector<1x8x32xbf16>
    %283 = vector.shape_cast %282 : vector<1x8x32xbf16> to vector<8x32xbf16>
    %cst_83 = arith.constant dense<0.000000e+00> : vector<8x128xf32>
    %284 = tpu.matmul %283, %6, %cst_83 {dimension_numbers = #tpu.dot_dimension_numbers<[1], [0], [0], [1], [0, 0, 1, 1], [], []>} : vector<8x32xbf16>, vector<32x128xbf16>, vector<8x128xf32> -> vector<8x128xf32>
    %285 = arith.truncf %236 : vector<8x32xf32> to vector<8x32xbf16>
    %cst_84 = arith.constant dense<0.000000e+00> : vector<8x128xf32>
    %286 = tpu.matmul %285, %7, %cst_84 {dimension_numbers = #tpu.dot_dimension_numbers<[1], [0], [0], [1], [0, 0, 1, 1], [], []>} : vector<8x32xbf16>, vector<32x128xbf16>, vector<8x128xf32> -> vector<8x128xf32>
    %287 = arith.addf %284, %286 : vector<8x128xf32>
    %288 = vector.broadcast %8 : vector<1x128xf32> to vector<8x128xf32>
    %289 = arith.addf %287, %288 : vector<8x128xf32>
    %290 = vector.extract_strided_slice %289 {offsets = [0, 0], sizes = [8, 32], strides = [1, 1]} : vector<8x128xf32> to vector<8x32xf32>
    %291 = arith.negf %290 : vector<8x32xf32>
    %292 = math.exp %291 : vector<8x32xf32>
    %cst_85 = arith.constant 1.000000e+00 : f32
    %293 = vector.broadcast %cst_85 : f32 to vector<8x32xf32>
    %294 = arith.addf %293, %292 : vector<8x32xf32>
    %295 = arith.divf %293, %294 : vector<8x32xf32>
    %296 = vector.extract_strided_slice %289 {offsets = [0, 32], sizes = [8, 32], strides = [1, 1]} : vector<8x128xf32> to vector<8x32xf32>
    %297 = arith.negf %296 : vector<8x32xf32>
    %298 = math.exp %297 : vector<8x32xf32>
    %cst_86 = arith.constant 1.000000e+00 : f32
    %299 = vector.broadcast %cst_86 : f32 to vector<8x32xf32>
    %300 = arith.addf %299, %298 : vector<8x32xf32>
    %301 = arith.divf %299, %300 : vector<8x32xf32>
    %302 = vector.extract_strided_slice %289 {offsets = [0, 64], sizes = [8, 32], strides = [1, 1]} : vector<8x128xf32> to vector<8x32xf32>
    %303 = math.tanh %302 : vector<8x32xf32>
    %304 = vector.extract_strided_slice %289 {offsets = [0, 96], sizes = [8, 32], strides = [1, 1]} : vector<8x128xf32> to vector<8x32xf32>
    %305 = arith.negf %304 : vector<8x32xf32>
    %306 = math.exp %305 : vector<8x32xf32>
    %cst_87 = arith.constant 1.000000e+00 : f32
    %307 = vector.broadcast %cst_87 : f32 to vector<8x32xf32>
    %308 = arith.addf %307, %306 : vector<8x32xf32>
    %309 = arith.divf %307, %308 : vector<8x32xf32>
    %310 = arith.mulf %301, %234 : vector<8x32xf32>
    %311 = arith.mulf %295, %303 : vector<8x32xf32>
    %312 = arith.addf %310, %311 : vector<8x32xf32>
    %313 = math.tanh %312 : vector<8x32xf32>
    %314 = arith.mulf %309, %313 : vector<8x32xf32>
    %315 = arith.truncf %280 : vector<8x32xf32> to vector<8x32xbf16>
    %316 = arith.index_cast %c3_i32 : i32 to index
    %c0_88 = arith.constant 0 : index
    %c0_89 = arith.constant 0 : index
    %317 = vector.load %arg9[%316, %c0_88, %c0_89] : memref<6x8x32xbf16, #tpu.memory_space<vmem>>, vector<1x8x32xbf16>
    %318 = vector.shape_cast %317 : vector<1x8x32xbf16> to vector<8x32xbf16>
    %319 = vector.shape_cast %315 : vector<8x32xbf16> to vector<1x8x32xbf16>
    tpu.vector_store %arg9[%316, %c0_88, %c0_89], %319 {strides = array<i32>} : memref<6x8x32xbf16, #tpu.memory_space<vmem>>, vector<1x8x32xbf16>,
    %320 = arith.truncf %314 : vector<8x32xf32> to vector<8x32xbf16>
    %321 = arith.index_cast %c3_i32 : i32 to index
    %c0_90 = arith.constant 0 : index
    %c0_91 = arith.constant 0 : index
    %322 = vector.load %arg10[%321, %c0_90, %c0_91] : memref<6x8x32xbf16, #tpu.memory_space<vmem>>, vector<1x8x32xbf16>
    %323 = vector.shape_cast %322 : vector<1x8x32xbf16> to vector<8x32xbf16>
    %324 = vector.shape_cast %320 : vector<8x32xbf16> to vector<1x8x32xbf16>
    tpu.vector_store %arg10[%321, %c0_90, %c0_91], %324 {strides = array<i32>} : memref<6x8x32xbf16, #tpu.memory_space<vmem>>, vector<1x8x32xbf16>,
    %c4_i32 = arith.constant 4 : i32
    %325 = arith.index_cast %c4_i32 : i32 to index
    %c0_92 = arith.constant 0 : index
    %c0_93 = arith.constant 0 : index
    %326 = vector.load %arg1[%325, %c0_92, %c0_93] : memref<6x8x32xbf16, #tpu.memory_space<vmem>>, vector<1x8x32xbf16>
    %327 = vector.shape_cast %326 : vector<1x8x32xbf16> to vector<8x32xbf16>
    %cst_94 = arith.constant dense<0.000000e+00> : vector<8x128xf32>
    %328 = tpu.matmul %327, %3, %cst_94 {dimension_numbers = #tpu.dot_dimension_numbers<[1], [0], [0], [1], [0, 0, 1, 1], [], []>} : vector<8x32xbf16>, vector<32x128xbf16>, vector<8x128xf32> -> vector<8x128xf32>
    %329 = arith.truncf %280 : vector<8x32xf32> to vector<8x32xbf16>
    %cst_95 = arith.constant dense<0.000000e+00> : vector<8x128xf32>
    %330 = tpu.matmul %329, %4, %cst_95 {dimension_numbers = #tpu.dot_dimension_numbers<[1], [0], [0], [1], [0, 0, 1, 1], [], []>} : vector<8x32xbf16>, vector<32x128xbf16>, vector<8x128xf32> -> vector<8x128xf32>
    %331 = arith.addf %328, %330 : vector<8x128xf32>
    %332 = vector.broadcast %5 : vector<1x128xf32> to vector<8x128xf32>
    %333 = arith.addf %331, %332 : vector<8x128xf32>
    %334 = vector.extract_strided_slice %333 {offsets = [0, 0], sizes = [8, 32], strides = [1, 1]} : vector<8x128xf32> to vector<8x32xf32>
    %335 = arith.negf %334 : vector<8x32xf32>
    %336 = math.exp %335 : vector<8x32xf32>
    %cst_96 = arith.constant 1.000000e+00 : f32
    %337 = vector.broadcast %cst_96 : f32 to vector<8x32xf32>
    %338 = arith.addf %337, %336 : vector<8x32xf32>
    %339 = arith.divf %337, %338 : vector<8x32xf32>
    %340 = vector.extract_strided_slice %333 {offsets = [0, 32], sizes = [8, 32], strides = [1, 1]} : vector<8x128xf32> to vector<8x32xf32>
    %341 = arith.negf %340 : vector<8x32xf32>
    %342 = math.exp %341 : vector<8x32xf32>
    %cst_97 = arith.constant 1.000000e+00 : f32
    %343 = vector.broadcast %cst_97 : f32 to vector<8x32xf32>
    %344 = arith.addf %343, %342 : vector<8x32xf32>
    %345 = arith.divf %343, %344 : vector<8x32xf32>
    %346 = vector.extract_strided_slice %333 {offsets = [0, 64], sizes = [8, 32], strides = [1, 1]} : vector<8x128xf32> to vector<8x32xf32>
    %347 = math.tanh %346 : vector<8x32xf32>
    %348 = vector.extract_strided_slice %333 {offsets = [0, 96], sizes = [8, 32], strides = [1, 1]} : vector<8x128xf32> to vector<8x32xf32>
    %349 = arith.negf %348 : vector<8x32xf32>
    %350 = math.exp %349 : vector<8x32xf32>
    %cst_98 = arith.constant 1.000000e+00 : f32
    %351 = vector.broadcast %cst_98 : f32 to vector<8x32xf32>
    %352 = arith.addf %351, %350 : vector<8x32xf32>
    %353 = arith.divf %351, %352 : vector<8x32xf32>
    %354 = arith.mulf %345, %278 : vector<8x32xf32>
    %355 = arith.mulf %339, %347 : vector<8x32xf32>
    %356 = arith.addf %354, %355 : vector<8x32xf32>
    %357 = math.tanh %356 : vector<8x32xf32>
    %358 = arith.mulf %353, %357 : vector<8x32xf32>
    %359 = arith.index_cast %c4_i32 : i32 to index
    %c0_99 = arith.constant 0 : index
    %c0_100 = arith.constant 0 : index
    %360 = vector.load %arg2[%359, %c0_99, %c0_100] : memref<6x8x32xbf16, #tpu.memory_space<vmem>>, vector<1x8x32xbf16>
    %361 = vector.shape_cast %360 : vector<1x8x32xbf16> to vector<8x32xbf16>
    %cst_101 = arith.constant dense<0.000000e+00> : vector<8x128xf32>
    %362 = tpu.matmul %361, %6, %cst_101 {dimension_numbers = #tpu.dot_dimension_numbers<[1], [0], [0], [1], [0, 0, 1, 1], [], []>} : vector<8x32xbf16>, vector<32x128xbf16>, vector<8x128xf32> -> vector<8x128xf32>
    %363 = arith.truncf %314 : vector<8x32xf32> to vector<8x32xbf16>
    %cst_102 = arith.constant dense<0.000000e+00> : vector<8x128xf32>
    %364 = tpu.matmul %363, %7, %cst_102 {dimension_numbers = #tpu.dot_dimension_numbers<[1], [0], [0], [1], [0, 0, 1, 1], [], []>} : vector<8x32xbf16>, vector<32x128xbf16>, vector<8x128xf32> -> vector<8x128xf32>
    %365 = arith.addf %362, %364 : vector<8x128xf32>
    %366 = vector.broadcast %8 : vector<1x128xf32> to vector<8x128xf32>
    %367 = arith.addf %365, %366 : vector<8x128xf32>
    %368 = vector.extract_strided_slice %367 {offsets = [0, 0], sizes = [8, 32], strides = [1, 1]} : vector<8x128xf32> to vector<8x32xf32>
    %369 = arith.negf %368 : vector<8x32xf32>
    %370 = math.exp %369 : vector<8x32xf32>
    %cst_103 = arith.constant 1.000000e+00 : f32
    %371 = vector.broadcast %cst_103 : f32 to vector<8x32xf32>
    %372 = arith.addf %371, %370 : vector<8x32xf32>
    %373 = arith.divf %371, %372 : vector<8x32xf32>
    %374 = vector.extract_strided_slice %367 {offsets = [0, 32], sizes = [8, 32], strides = [1, 1]} : vector<8x128xf32> to vector<8x32xf32>
    %375 = arith.negf %374 : vector<8x32xf32>
    %376 = math.exp %375 : vector<8x32xf32>
    %cst_104 = arith.constant 1.000000e+00 : f32
    %377 = vector.broadcast %cst_104 : f32 to vector<8x32xf32>
    %378 = arith.addf %377, %376 : vector<8x32xf32>
    %379 = arith.divf %377, %378 : vector<8x32xf32>
    %380 = vector.extract_strided_slice %367 {offsets = [0, 64], sizes = [8, 32], strides = [1, 1]} : vector<8x128xf32> to vector<8x32xf32>
    %381 = math.tanh %380 : vector<8x32xf32>
    %382 = vector.extract_strided_slice %367 {offsets = [0, 96], sizes = [8, 32], strides = [1, 1]} : vector<8x128xf32> to vector<8x32xf32>
    %383 = arith.negf %382 : vector<8x32xf32>
    %384 = math.exp %383 : vector<8x32xf32>
    %cst_105 = arith.constant 1.000000e+00 : f32
    %385 = vector.broadcast %cst_105 : f32 to vector<8x32xf32>
    %386 = arith.addf %385, %384 : vector<8x32xf32>
    %387 = arith.divf %385, %386 : vector<8x32xf32>
    %388 = arith.mulf %379, %312 : vector<8x32xf32>
    %389 = arith.mulf %373, %381 : vector<8x32xf32>
    %390 = arith.addf %388, %389 : vector<8x32xf32>
    %391 = math.tanh %390 : vector<8x32xf32>
    %392 = arith.mulf %387, %391 : vector<8x32xf32>
    %393 = arith.truncf %358 : vector<8x32xf32> to vector<8x32xbf16>
    %394 = arith.index_cast %c4_i32 : i32 to index
    %c0_106 = arith.constant 0 : index
    %c0_107 = arith.constant 0 : index
    %395 = vector.load %arg9[%394, %c0_106, %c0_107] : memref<6x8x32xbf16, #tpu.memory_space<vmem>>, vector<1x8x32xbf16>
    %396 = vector.shape_cast %395 : vector<1x8x32xbf16> to vector<8x32xbf16>
    %397 = vector.shape_cast %393 : vector<8x32xbf16> to vector<1x8x32xbf16>
    tpu.vector_store %arg9[%394, %c0_106, %c0_107], %397 {strides = array<i32>} : memref<6x8x32xbf16, #tpu.memory_space<vmem>>, vector<1x8x32xbf16>,
    %398 = arith.truncf %392 : vector<8x32xf32> to vector<8x32xbf16>
    %399 = arith.index_cast %c4_i32 : i32 to index
    %c0_108 = arith.constant 0 : index
    %c0_109 = arith.constant 0 : index
    %400 = vector.load %arg10[%399, %c0_108, %c0_109] : memref<6x8x32xbf16, #tpu.memory_space<vmem>>, vector<1x8x32xbf16>
    %401 = vector.shape_cast %400 : vector<1x8x32xbf16> to vector<8x32xbf16>
    %402 = vector.shape_cast %398 : vector<8x32xbf16> to vector<1x8x32xbf16>
    tpu.vector_store %arg10[%399, %c0_108, %c0_109], %402 {strides = array<i32>} : memref<6x8x32xbf16, #tpu.memory_space<vmem>>, vector<1x8x32xbf16>,
    %c5_i32 = arith.constant 5 : i32
    %403 = arith.index_cast %c5_i32 : i32 to index
    %c0_110 = arith.constant 0 : index
    %c0_111 = arith.constant 0 : index
    %404 = vector.load %arg1[%403, %c0_110, %c0_111] : memref<6x8x32xbf16, #tpu.memory_space<vmem>>, vector<1x8x32xbf16>
    %405 = vector.shape_cast %404 : vector<1x8x32xbf16> to vector<8x32xbf16>
    %cst_112 = arith.constant dense<0.000000e+00> : vector<8x128xf32>
    %406 = tpu.matmul %405, %3, %cst_112 {dimension_numbers = #tpu.dot_dimension_numbers<[1], [0], [0], [1], [0, 0, 1, 1], [], []>} : vector<8x32xbf16>, vector<32x128xbf16>, vector<8x128xf32> -> vector<8x128xf32>
    %407 = arith.truncf %358 : vector<8x32xf32> to vector<8x32xbf16>
    %cst_113 = arith.constant dense<0.000000e+00> : vector<8x128xf32>
    %408 = tpu.matmul %407, %4, %cst_113 {dimension_numbers = #tpu.dot_dimension_numbers<[1], [0], [0], [1], [0, 0, 1, 1], [], []>} : vector<8x32xbf16>, vector<32x128xbf16>, vector<8x128xf32> -> vector<8x128xf32>
    %409 = arith.addf %406, %408 : vector<8x128xf32>
    %410 = vector.broadcast %5 : vector<1x128xf32> to vector<8x128xf32>
    %411 = arith.addf %409, %410 : vector<8x128xf32>
    %412 = vector.extract_strided_slice %411 {offsets = [0, 0], sizes = [8, 32], strides = [1, 1]} : vector<8x128xf32> to vector<8x32xf32>
    %413 = arith.negf %412 : vector<8x32xf32>
    %414 = math.exp %413 : vector<8x32xf32>
    %cst_114 = arith.constant 1.000000e+00 : f32
    %415 = vector.broadcast %cst_114 : f32 to vector<8x32xf32>
    %416 = arith.addf %415, %414 : vector<8x32xf32>
    %417 = arith.divf %415, %416 : vector<8x32xf32>
    %418 = vector.extract_strided_slice %411 {offsets = [0, 32], sizes = [8, 32], strides = [1, 1]} : vector<8x128xf32> to vector<8x32xf32>
    %419 = arith.negf %418 : vector<8x32xf32>
    %420 = math.exp %419 : vector<8x32xf32>
    %cst_115 = arith.constant 1.000000e+00 : f32
    %421 = vector.broadcast %cst_115 : f32 to vector<8x32xf32>
    %422 = arith.addf %421, %420 : vector<8x32xf32>
    %423 = arith.divf %421, %422 : vector<8x32xf32>
    %424 = vector.extract_strided_slice %411 {offsets = [0, 64], sizes = [8, 32], strides = [1, 1]} : vector<8x128xf32> to vector<8x32xf32>
    %425 = math.tanh %424 : vector<8x32xf32>
    %426 = vector.extract_strided_slice %411 {offsets = [0, 96], sizes = [8, 32], strides = [1, 1]} : vector<8x128xf32> to vector<8x32xf32>
    %427 = arith.negf %426 : vector<8x32xf32>
    %428 = math.exp %427 : vector<8x32xf32>
    %cst_116 = arith.constant 1.000000e+00 : f32
    %429 = vector.broadcast %cst_116 : f32 to vector<8x32xf32>
    %430 = arith.addf %429, %428 : vector<8x32xf32>
    %431 = arith.divf %429, %430 : vector<8x32xf32>
    %432 = arith.mulf %423, %356 : vector<8x32xf32>
    %433 = arith.mulf %417, %425 : vector<8x32xf32>
    %434 = arith.addf %432, %433 : vector<8x32xf32>
    %435 = math.tanh %434 : vector<8x32xf32>
    %436 = arith.mulf %431, %435 : vector<8x32xf32>
    %437 = arith.index_cast %c5_i32 : i32 to index
    %c0_117 = arith.constant 0 : index
    %c0_118 = arith.constant 0 : index
    %438 = vector.load %arg2[%437, %c0_117, %c0_118] : memref<6x8x32xbf16, #tpu.memory_space<vmem>>, vector<1x8x32xbf16>
    %439 = vector.shape_cast %438 : vector<1x8x32xbf16> to vector<8x32xbf16>
    %cst_119 = arith.constant dense<0.000000e+00> : vector<8x128xf32>
    %440 = tpu.matmul %439, %6, %cst_119 {dimension_numbers = #tpu.dot_dimension_numbers<[1], [0], [0], [1], [0, 0, 1, 1], [], []>} : vector<8x32xbf16>, vector<32x128xbf16>, vector<8x128xf32> -> vector<8x128xf32>
    %441 = arith.truncf %392 : vector<8x32xf32> to vector<8x32xbf16>
    %cst_120 = arith.constant dense<0.000000e+00> : vector<8x128xf32>
    %442 = tpu.matmul %441, %7, %cst_120 {dimension_numbers = #tpu.dot_dimension_numbers<[1], [0], [0], [1], [0, 0, 1, 1], [], []>} : vector<8x32xbf16>, vector<32x128xbf16>, vector<8x128xf32> -> vector<8x128xf32>
    %443 = arith.addf %440, %442 : vector<8x128xf32>
    %444 = vector.broadcast %8 : vector<1x128xf32> to vector<8x128xf32>
    %445 = arith.addf %443, %444 : vector<8x128xf32>
    %446 = vector.extract_strided_slice %445 {offsets = [0, 0], sizes = [8, 32], strides = [1, 1]} : vector<8x128xf32> to vector<8x32xf32>
    %447 = arith.negf %446 : vector<8x32xf32>
    %448 = math.exp %447 : vector<8x32xf32>
    %cst_121 = arith.constant 1.000000e+00 : f32
    %449 = vector.broadcast %cst_121 : f32 to vector<8x32xf32>
    %450 = arith.addf %449, %448 : vector<8x32xf32>
    %451 = arith.divf %449, %450 : vector<8x32xf32>
    %452 = vector.extract_strided_slice %445 {offsets = [0, 32], sizes = [8, 32], strides = [1, 1]} : vector<8x128xf32> to vector<8x32xf32>
    %453 = arith.negf %452 : vector<8x32xf32>
    %454 = math.exp %453 : vector<8x32xf32>
    %cst_122 = arith.constant 1.000000e+00 : f32
    %455 = vector.broadcast %cst_122 : f32 to vector<8x32xf32>
    %456 = arith.addf %455, %454 : vector<8x32xf32>
    %457 = arith.divf %455, %456 : vector<8x32xf32>
    %458 = vector.extract_strided_slice %445 {offsets = [0, 64], sizes = [8, 32], strides = [1, 1]} : vector<8x128xf32> to vector<8x32xf32>
    %459 = math.tanh %458 : vector<8x32xf32>
    %460 = vector.extract_strided_slice %445 {offsets = [0, 96], sizes = [8, 32], strides = [1, 1]} : vector<8x128xf32> to vector<8x32xf32>
    %461 = arith.negf %460 : vector<8x32xf32>
    %462 = math.exp %461 : vector<8x32xf32>
    %cst_123 = arith.constant 1.000000e+00 : f32
    %463 = vector.broadcast %cst_123 : f32 to vector<8x32xf32>
    %464 = arith.addf %463, %462 : vector<8x32xf32>
    %465 = arith.divf %463, %464 : vector<8x32xf32>
    %466 = arith.mulf %457, %390 : vector<8x32xf32>
    %467 = arith.mulf %451, %459 : vector<8x32xf32>
    %468 = arith.addf %466, %467 : vector<8x32xf32>
    %469 = math.tanh %468 : vector<8x32xf32>
    %470 = arith.mulf %465, %469 : vector<8x32xf32>
    %471 = arith.truncf %436 : vector<8x32xf32> to vector<8x32xbf16>
    %472 = arith.index_cast %c5_i32 : i32 to index
    %c0_124 = arith.constant 0 : index
    %c0_125 = arith.constant 0 : index
    %473 = vector.load %arg9[%472, %c0_124, %c0_125] : memref<6x8x32xbf16, #tpu.memory_space<vmem>>, vector<1x8x32xbf16>
    %474 = vector.shape_cast %473 : vector<1x8x32xbf16> to vector<8x32xbf16>
    %475 = vector.shape_cast %471 : vector<8x32xbf16> to vector<1x8x32xbf16>
    tpu.vector_store %arg9[%472, %c0_124, %c0_125], %475 {strides = array<i32>} : memref<6x8x32xbf16, #tpu.memory_space<vmem>>, vector<1x8x32xbf16>,
    %476 = arith.truncf %470 : vector<8x32xf32> to vector<8x32xbf16>
    %477 = arith.index_cast %c5_i32 : i32 to index
    %c0_126 = arith.constant 0 : index
    %c0_127 = arith.constant 0 : index
    %478 = vector.load %arg10[%477, %c0_126, %c0_127] : memref<6x8x32xbf16, #tpu.memory_space<vmem>>, vector<1x8x32xbf16>
    %479 = vector.shape_cast %478 : vector<1x8x32xbf16> to vector<8x32xbf16>
    %480 = vector.shape_cast %476 : vector<8x32xbf16> to vector<1x8x32xbf16>
    tpu.vector_store %arg10[%477, %c0_126, %c0_127], %480 {strides = array<i32>} : memref<6x8x32xbf16, #tpu.memory_space<vmem>>, vector<1x8x32xbf16>,
    %c6_i32 = arith.constant 6 : i32
    %c0_128 = arith.constant 0 : index
    %c0_129 = arith.constant 0 : index
    %481 = vector.load %arg11[%c0_128, %c0_129] : memref<8x32xf32, #tpu.memory_space<vmem>>, vector<8x32xf32>
    tpu.vector_store %arg11[%c0_128, %c0_129], %436 {strides = array<i32>} : memref<8x32xf32, #tpu.memory_space<vmem>>, vector<8x32xf32>,
    %c0_130 = arith.constant 0 : index
    %c0_131 = arith.constant 0 : index
    %482 = vector.load %arg12[%c0_130, %c0_131] : memref<8x32xf32, #tpu.memory_space<vmem>>, vector<8x32xf32>
    tpu.vector_store %arg12[%c0_130, %c0_131], %434 {strides = array<i32>} : memref<8x32xf32, #tpu.memory_space<vmem>>, vector<8x32xf32>,
    %c0_132 = arith.constant 0 : index
    %c0_133 = arith.constant 0 : index
    %483 = vector.load %arg13[%c0_132, %c0_133] : memref<8x32xf32, #tpu.memory_space<vmem>>, vector<8x32xf32>
    tpu.vector_store %arg13[%c0_132, %c0_133], %470 {strides = array<i32>} : memref<8x32xf32, #tpu.memory_space<vmem>>, vector<8x32xf32>,
    %c0_134 = arith.constant 0 : index
    %c0_135 = arith.constant 0 : index
    %484 = vector.load %arg14[%c0_134, %c0_135] : memref<8x32xf32, #tpu.memory_space<vmem>>, vector<8x32xf32>
    tpu.vector_store %arg14[%c0_134, %c0_135], %468 {strides = array<i32>} : memref<8x32xf32, #tpu.memory_space<vmem>>, vector<8x32xf32>,
    return
  }
  func.func @transform_0(%arg0: i32) -> (i32, i32, i32) {
    %c0_i32 = arith.constant 0 : i32
    %c0_i32_0 = arith.constant 0 : i32
    %c0_i32_1 = arith.constant 0 : i32
    return %arg0, %c0_i32, %c0_i32_0 : i32, i32, i32
  }
  func.func @transform_1(%arg0: i32) -> (i32, i32, i32) {
    %c0_i32 = arith.constant 0 : i32
    %c0_i32_0 = arith.constant 0 : i32
    %c0_i32_1 = arith.constant 0 : i32
    return %arg0, %c0_i32, %c0_i32_0 : i32, i32, i32
  }
  func.func @transform_2(%arg0: i32) -> (i32, i32) {
    %c0_i32 = arith.constant 0 : i32
    %c0_i32_0 = arith.constant 0 : i32
    %c0_i32_1 = arith.constant 0 : i32
    return %c0_i32, %c0_i32_0 : i32, i32
  }
  func.func @transform_3(%arg0: i32) -> (i32, i32) {
    %c0_i32 = arith.constant 0 : i32
    %c0_i32_0 = arith.constant 0 : i32
    %c0_i32_1 = arith.constant 0 : i32
    return %c0_i32, %c0_i32_0 : i32, i32
  }
  func.func @transform_4(%arg0: i32) -> (i32, i32) {
    %c0_i32 = arith.constant 0 : i32
    %c0_i32_0 = arith.constant 0 : i32
    %c0_i32_1 = arith.constant 0 : i32
    return %c0_i32, %c0_i32_0 : i32, i32
  }
  func.func @transform_5(%arg0: i32) -> (i32, i32) {
    %c0_i32 = arith.constant 0 : i32
    %c0_i32_0 = arith.constant 0 : i32
    %c0_i32_1 = arith.constant 0 : i32
    return %c0_i32, %c0_i32_0 : i32, i32
  }
  func.func @transform_6(%arg0: i32) -> (i32, i32) {
    %c0_i32 = arith.constant 0 : i32
    %c0_i32_0 = arith.constant 0 : i32
    %c0_i32_1 = arith.constant 0 : i32
    return %c0_i32, %c0_i32_0 : i32, i32
  }
  func.func @transform_7(%arg0: i32) -> (i32, i32) {
    %c0_i32 = arith.constant 0 : i32
    %c0_i32_0 = arith.constant 0 : i32
    %c0_i32_1 = arith.constant 0 : i32
    return %c0_i32, %c0_i32_0 : i32, i32
  }
  func.func @transform_8(%arg0: i32) -> (i32, i32, i32) {
    %c0_i32 = arith.constant 0 : i32
    %c0_i32_0 = arith.constant 0 : i32
    %c0_i32_1 = arith.constant 0 : i32
    return %arg0, %c0_i32, %c0_i32_0 : i32, i32, i32
  }
  func.func @transform_9(%arg0: i32) -> (i32, i32, i32) {
    %c0_i32 = arith.constant 0 : i32
    %c0_i32_0 = arith.constant 0 : i32
    %c0_i32_1 = arith.constant 0 : i32
    return %arg0, %c0_i32, %c0_i32_0 : i32, i32, i32
  }
}

</mosaic_0001>

<bundles_post_ra>
// kernel: tpu_custom_call.1
= control target key start
LH: loop header
LB: loop body
LE: loop exit
PB: predicated region body
PF: predicated region fallthrough
CT: control target
= control target key end

     0   :  { %15 = vsyncpa [#allocation7], 0  ;;  %s2043_s0 = inlined_call_operand.hbm [shape: bf16[6,8,32], index: 0, kind: input, shape index: {}]   ;;  %s2044_s1 = inlined_call_operand.hbm [shape: bf16[6,8,32], index: 1, kind: input, shape index: {}]   ;;  %s2045_s2 = inlined_call_operand.hbm [shape: bf16[32,128], index: 2, kind: input, shape index: {}]   ;;  %s2046_s3 = inlined_call_operand.hbm [shape: bf16[32,128], index: 3, kind: input, shape index: {}]   ;;  %s2047_s4 = inlined_call_operand.vmem [shape: f32[1,128], index: 4, kind: input, shape index: {}]   ;;  %s2048_s5 = inlined_call_operand.hbm [shape: bf16[32,128], index: 5, kind: input, shape index: {}]   ;;  %s2049_s6 = inlined_call_operand.hbm [shape: bf16[32,128], index: 6, kind: input, shape index: {}]   ;;  %s2050_s7 = inlined_call_operand.vmem [shape: f32[1,128], index: 7, kind: input, shape index: {}]   ;;  %s2051_s8 = inlined_call_operand.hbm [shape: bf16[6,8,32], index: 8, kind: output, shape index: {0}]   ;;  %s2052_s9 = inlined_call_operand.hbm [shape: bf16[6,8,32], index: 9, kind: output, shape index: {1}]  }
   0x1   :  { %16 = vsyncpa [#allocation10], 0 }
   0x2   :  { %17 = vsyncpa [#allocation13], 0 }
   0x3   :  { %18 = vsyncpa [#allocation16], 0 }
   0x4   :  { %19 = vsyncpa [#allocation8], 0 }
   0x5   :  { %20 = vsyncpa [#allocation19], 0  ;;  %s38_s11 = sshll.u32 %s2044_s1, 4  ;;  %s1660_s12 = smov [#allocation9]   ;;  %s39_s11 = int_to_ptr.hbm [resolvable:$true] %s38_s11 }
   0x6   :  { %s40_s13 = sshll.u32 %s1660_s12, 4  ;;  %s64_s16 = sshll.u32 %s2046_s3, 4  ;;  %s41_s13 = int_to_ptr.vmem [resolvable:$true] %s40_s13  ;;  %s65_s16 = int_to_ptr.hbm [resolvable:$true] %s64_s16 }
   0x7   :  { %s1661_s17 = smov 64   ;;  %s1662_s18 = smov 4  }
   0x8   :  { %46 = dma.hbm_to_vmem [thread:$0]  %s39_s11, 384, %s41_s13, [#allocation10], %s1661_s17, %s1661_s17, %s1662_s18  }
   0x9   :  { %s1663_s19 = smov [#allocation12]   ;;  %s25_s1 = sshll.u32 %s2043_s0, 4  ;;  %s26_s1 = int_to_ptr.hbm [resolvable:$true] %s25_s1 }
   0xa   :  { %s66_s20 = sshll.u32 %s1663_s19, 4  ;;  %s51_s24 = sshll.u32 %s2045_s2, 4  ;;  %s67_s20 = int_to_ptr.vmem [resolvable:$true] %s66_s20  ;;  %s52_s24 = int_to_ptr.hbm [resolvable:$true] %s51_s24 }
   0xb   :  { %72 = dma.hbm_to_vmem [thread:$0]  %s65_s16, 256, %s67_s20, [#allocation13], %s1661_s17, %s1661_s17, %s1662_s18  }
   0xc   :  { %s1664_s25 = smov [#allocation6]   ;;  %s1665_s27 = smov [#allocation11]  }
   0xd   :  { %s27_s26 = sshll.u32 %s1664_s25, 4  ;;  %s53_s0 = sshll.u32 %s1665_s27, 4  ;;  %s28_s26 = int_to_ptr.vmem [resolvable:$true] %s27_s26  ;;  %s54_s0 = int_to_ptr.vmem [resolvable:$true] %s53_s0 }
   0xe   :  { %33 = dma.hbm_to_vmem [thread:$0]  %s26_s1, 384, %s28_s26, [#allocation7], %s1661_s17, %s1661_s17, %s1662_s18  }
   0xf   :  { %s79_s30 = sshll.u32 %s2048_s5, 4  ;;  %s92_s11 = sshll.u32 %s2049_s6, 4  ;;  %s80_s30 = int_to_ptr.hbm [resolvable:$true] %s79_s30  ;;  %s93_s11 = int_to_ptr.hbm [resolvable:$true] %s92_s11 }
  0x10   :  { %59 = dma.hbm_to_vmem [thread:$0]  %s52_s24, 256, %s54_s0, [#allocation10], %s1661_s17, %s1661_s17, %s1662_s18  }
  0x11   :  { %s1666_s12 = smov [#allocation14]   ;;  %s1667_s14 = smov [#allocation15]  }
  0x12   :  { %s81_s13 = sshll.u32 %s1666_s12, 4  ;;  %s94_s5 = sshll.u32 %s1667_s14, 4  ;;  %s82_s13 = int_to_ptr.vmem [resolvable:$true] %s81_s13  ;;  %s95_s5 = int_to_ptr.vmem [resolvable:$true] %s94_s5 }
  0x13   :  { %87 = dma.hbm_to_vmem [thread:$0]  %s80_s30, 256, %s82_s13, [#allocation13], %s1661_s17, %s1661_s17, %s1662_s18  }
  0x14   :  { %100 = dma.hbm_to_vmem [thread:$0]  %s93_s11, 256, %s95_s5, [#allocation16], %s1661_s17, %s1661_s17, %s1662_s18  }
  0x15   :  { %1648 = dma.done.wait [#allocation7], 384  }
  0x16   :  { %1649 = vsyncadd [#allocation7], 4294966912 }
  0x17   :  { %1650 = dma.done.wait [#allocation10], 640  }
  0x18   :  { %1651 = vsyncadd [#allocation10], 4294966656 }
  0x19   :  { %1652 = dma.done.wait [#allocation13], 512  }
  0x1a   :  { %1653 = vsyncadd [#allocation13], 4294966784 }
  0x1b   :  { %1654 = dma.done.wait [#allocation16], 256  }
  0x1c   :  { %1655 = vsyncadd [#allocation16], 4294967040  ;;  %vm132_vm0 = vcmask 261120   ;;  %v1668_v0 = vmov 0.0   ;;  %v1763_v1 = vld [vmem:[#allocation15 + $0x8] sm:$0xff]  ;;  %v1765_v2 = vld [vmem:[#allocation14 + $0x8] sm:$0xff] }
  0x1d   :  { %135 = vst.msk [vmem:[#allocation4] sm:$0xff] %vm132_vm0, %v1668_v0  ;;  %v1767_v3 = vld [vmem:[#allocation15] sm:$0xff]  ;;  %v1769_v4 = vld [vmem:[#allocation14] sm:$0xff]  ;;  %286 = vmatpush.bf16.msra.mxu2 %v1763_v1  ;;  %314 = vmatpush.bf16.msra.mxu3 %v1765_v2  ;;  %v1773_v6 = vld [vmem:[#allocation12 + $0x8] sm:$0xff]  ;;  %s1669_s6 = smov 32   ;;  %s1235_s3 = sshll.u32 %s2051_s8, 4  ;;  %s1236_s3 = int_to_ptr.hbm [resolvable:$true] %s1235_s3 }
  0x1e   :  { %133 = vst.msk [vmem:[#allocation2] sm:$0xff] %vm132_vm0, %v1668_v0  ;;  %v1775_v7 = vld [vmem:[#allocation11 + $0x8] sm:$0xff]  ;;  %v1777_v8 = vld [vmem:[#allocation12] sm:$0xff]  ;;  %v1779_v9 = vld [vmem:[#allocation11] sm:$0xff]  ;;  %183 = vmatpush.bf16.msra.mxu0 %v1773_v6  ;;  %s1672_s23 = smov [#allocation18]   ;;  %s1248_s26 = sshll.u32 %s2052_s9, 4  ;;  %s1249_s26 = int_to_ptr.hbm [resolvable:$true] %s1248_s26 }
  0x1f   :  { %134 = vst.msk [vmem:[#allocation3] sm:$0xff] %vm132_vm0, %v1668_v0  ;;  %211 = vmatpush.bf16.msra.mxu1 %v1775_v7  ;;  %v263_v14 = vld [vmem:[#allocation9] sm:$0xf]  ;;  %v159_v16 = vld [vmem:[#allocation6] sm:$0xf]  ;;  %s1246_s8 = sshll.u32 %s1672_s23, 4  ;;  %s1247_s8 = int_to_ptr.vmem [resolvable:$true] %s1246_s8 }
  0x20   :  { %136 = vst.msk [vmem:[#allocation5] sm:$0xff] %vm132_vm0, %v1668_v0  ;;  %v1812_v19 = vld [vmem:[%s2050_s7] ss:$0 sm:$0xff]  ;;  %s1671_s7 = smov [#allocation17]  }
  0x21   :  { %287 = vmatpush.bf16.msra.mxu2 %v1767_v3  ;;  %315 = vmatpush.bf16.msra.mxu3 %v1769_v4  ;;  %v1818_v25 = vld [vmem:[%s2047_s4] ss:$0 sm:$0xff]  ;;  %s1670_s4 = smov 96   ;;  %s1233_s21 = sshll.u32 %s1671_s7, 4  ;;  %s1234_s21 = int_to_ptr.vmem [resolvable:$true] %s1233_s21 }
  0x22   :  { %184 = vmatpush.bf16.msra.mxu0 %v1777_v8 }
  0x23   :  { %212 = vmatpush.bf16.msra.mxu1 %v1779_v9 }
  0x24   :  { %v157_v5 = vld [vmem:[#allocation4] sm:$0xff]  ;;  %1305 = vmatmul.msk.bf16.vlgmr.msra.gmra.mxu3 %vm132_vm0, %v263_v14 }
  0x25   :  { %v155_v10 = vld [vmem:[#allocation2] sm:$0xff]  ;;  %v264_v13 = vpack.c.bf16 %v157_v5, %v157_v5  ;;  %470 = vmatpush.bf16.msrb.mxu2 %v1763_v1  ;;  %486 = vmatpush.bf16.msrb.mxu3 %v1765_v2 }
  0x26   :  { %v156_v12 = vld [vmem:[#allocation3] sm:$0xff]  ;;  %v160_v15 = vpack.c.bf16 %v155_v10, %v155_v10  ;;  %394 = vmatpush.bf16.msrb.mxu0 %v1773_v6  ;;  %1286 = vmatmul.msk.bf16.vlgmr.msra.gmra.mxu1 %vm132_vm0, %v159_v16 }
  0x27   :  { %v158_v11 = vld [vmem:[#allocation5] sm:$0xff]  ;;  %243 = vrot.lane.b32.xlu2 %v156_v12, %s1669_s6  ;;  %1296 = vmatmul.msk.bf16.vlgmr.msra.gmra.mxu2 %vm132_vm0, %v264_v13 }
  0x28   :  { %346 = vrot.lane.b32.xlu1 %v158_v11, %s1669_s6  ;;  %410 = vmatpush.bf16.msrb.mxu1 %v1775_v7 }
  0x29   :  { %1277 = vmatmul.msk.bf16.vlgmr.msra.gmra.mxu0 %vm132_vm0, %v160_v15  ;;  %487 = vmatpush.bf16.msrb.mxu3 %v1769_v4 }
  0x2a   :  { %471 = vmatpush.bf16.msrb.mxu2 %v1767_v3  ;;  %395 = vmatpush.bf16.msrb.mxu0 %v1777_v8 }
  0x2c   :  { %411 = vmatpush.bf16.msrb.mxu1 %v1779_v9 }
  0x2d   :  { %652 = vmatpush.bf16.msra.mxu3 %v1765_v2 }
  0x2e   :  { %636 = vmatpush.bf16.msra.mxu2 %v1763_v1  ;;  %560 = vmatpush.bf16.msra.mxu0 %v1773_v6 }
  0x30   :  { %576 = vmatpush.bf16.msra.mxu1 %v1775_v7 }
  0x31   :  { %653 = vmatpush.bf16.msra.mxu3 %v1769_v4 }
  0x32   :  { %637 = vmatpush.bf16.msra.mxu2 %v1767_v3  ;;  %561 = vmatpush.bf16.msra.mxu0 %v1777_v8 }
  0x34   :  { %577 = vmatpush.bf16.msra.mxu1 %v1779_v9 }
  0x81   :  { %v244_v63 = vpop.permute.xlu2 %243 }
  0x9a   :  { %v347_v11 = vpop.permute.xlu1 %346 }
  0xa3   :  { %v214_v18 = vpop.f32.mrf.mxu1 }
  0xa6   :  { %v186_v17 = vpop.f32.mrf.mxu0 }
  0xa7   :  { %v317_v21 = vpop.f32.mrf.mxu3  ;;  %v215_v24 = vadd.f32 %v214_v18, %v186_v17  ;;  %v456_v17 = vld [vmem:[#allocation9 + $0x4] sm:$0xf] }
  0xa8   :  { %1311 = vmatmul.msk.bf16.vlgmr.msrb.gmra.mxu3 %vm132_vm0, %v456_v17 }
  0xa9   :  { %v221_v28 = vadd.f32 %v1818_v25, %v215_v24  ;;  %818 = vmatpush.bf16.msrb.mxu3 %v1765_v2 }
  0xaa   :  { %v289_v20 = vpop.f32.mrf.mxu2 }
  0xab   :  { %v318_v22 = vadd.f32 %v317_v21, %v289_v20  ;;  %v216_v27 = vpop.f32.mrf.mxu1  ;;  %v1287_v34 = vmul.f32 -1.442695, %v221_v28 }
  0xad   :  { %v324_v23 = vadd.f32 %v1812_v19, %v318_v22  ;;  %819 = vmatpush.bf16.msrb.mxu3 %v1769_v4 }
  0xae   :  { %v188_v26 = vpop.f32.mrf.mxu0 }
  0xaf   :  { %1360 = vtanh.f32 %v324_v23  ;;  %v319_v30 = vpop.f32.mrf.mxu3  ;;  %v1306_v33 = vmul.f32 -1.442695, %v324_v23 }
  0xb0   :  { %1362 = vtanh.f32 %v221_v28  ;;  %v380_v30 = vld [vmem:[#allocation6 + $0x4] sm:$0xf] }
  0xb1   :  { %1364 = vpow2.f32 %v1306_v33  ;;  %1308 = vmatmul.msk.bf16.vlgmr.msrb.gmra.mxu1 %vm132_vm0, %v380_v30 }
  0xb2   :  { %v291_v29 = vpop.f32.mrf.mxu2  ;;  %1366 = vpow2.f32 %v1287_v34  ;;  %742 = vmatpush.bf16.msrb.mxu1 %v1775_v7 }
  0xb5   :  { %v1361_v31 = vpop.eup %1360 }
  0xb6   :  { %351 = vrot.lane.b32.xlu0 %v1361_v31, %s1661_s17  ;;  %v1363_v32 = vpop.eup %1362  ;;  %743 = vmatpush.bf16.msrb.mxu1 %v1779_v9 }
  0xb7   :  { %v1365_v35 = vpop.eup %1364 }
  0xb8   :  { %v328_v36 = vadd.f32 1.0, %v1365_v35  ;;  %v1367_v37 = vpop.eup %1366 }
  0xb9   :  { %v225_v38 = vadd.f32 1.0, %v1367_v37 }
  0xba   :  { %1368 = vrcp.f32 %v328_v36  ;;  %v340_v47 = vand.u32 2147483648, %v328_v36  ;;  %vm334_vm2 = vweird.f32 %v328_v36  ;;  %v338_v48 = vand.u32 2147483647, %v328_v36 }
  0xbb   :  { %1370 = vrcp.f32 %v225_v38  ;;  %vm231_vm5 = vweird.f32 %v225_v38  ;;  %v237_v53 = vand.u32 2147483648, %v225_v38  ;;  %v235_v56 = vand.u32 2147483647, %v225_v38 }
  0xbc   :  { %v341_v51 = vor.u32 1.1754944e-38, %v340_v47  ;;  %vm339_vm4 = vcmp.eq.f32.partialorder %v338_v48, 8.507059e+37 }
  0xbd   :  { %v238_v58 = vor.u32 1.1754944e-38, %v237_v53  ;;  %vm236_vm8 = vcmp.eq.f32.partialorder %v235_v56, 8.507059e+37 }
  0xbe   :  { %248 = vrot.lane.b32.xlu0 %v1363_v32, %s1661_s17 }
  0xc0   :  { %v1369_v39 = vpop.eup %1368 }
  0xc1   :  { %v330_v40 = vmul.f32 %v1369_v39, %v328_v36  ;;  %v1371_v42 = vpop.eup %1370  ;;  %vm335_vm1 = vweird.f32 %v1369_v39 }
  0xc2   :  { %v227_v44 = vmul.f32 %v1371_v42, %v225_v38  ;;  %vm336_vm3 = vmor %vm334_vm2, %vm335_vm1  ;;  %vm232_vm6 = vweird.f32 %v1371_v42 }
  0xc3   :  { %v331_v41 = vsub.f32 1.0, %v330_v40  ;;  %vm233_vm7 = vmor %vm231_vm5, %vm232_vm6 }
  0xc4   :  { %v228_v46 = vsub.f32 1.0, %v227_v44 }
  0xc5   :  { %v332_v43 = vmul.f32 %v1369_v39, %v331_v41 }
  0xc6   :  { %v229_v50 = vmul.f32 %v1371_v42, %v228_v46 }
  0xc7   :  { %v333_v45 = vadd.f32 %v1369_v39, %v332_v43 }
  0xc8   :  { %v230_v55 = vadd.f32 %v1371_v42, %v229_v50 }
  0xc9   :  { %v337_v49 = vsel %vm336_vm3, %v1369_v39, %v333_v45 }
  0xca   :  { %v342_v52 = vsel %vm339_vm4, %v341_v51, %v337_v49  ;;  %v234_v59 = vsel %vm233_vm7, %v1371_v42, %v230_v55 }
  0xcb   :  { %v239_v60 = vsel %vm236_vm8, %v238_v58, %v234_v59  ;;  %v349_v13 = vmul.f32 %v347_v11, %v342_v52 }
  0xcc   :  { %v246_v0 = vmul.f32 %v244_v63, %v239_v60 }
 0x128   :  { %v352_v54 = vpop.permute.xlu0 %351 }
 0x129   :  { %v354_v57 = vmul.f32 %v352_v54, %v342_v52 }
 0x12b   :  { %356 = vrot.lane.b32.xlu1 %v354_v57, %s1669_s6  ;;  %v489_v33 = vpop.f32.mrf.mxu3 }
 0x12e   :  { %v413_v35 = vpop.f32.mrf.mxu1 }
 0x130   :  { %v249_v61 = vpop.permute.xlu0 %248 }
 0x131   :  { %v251_v62 = vmul.f32 %v249_v61, %v239_v60 }
 0x133   :  { %253 = vrot.lane.b32.xlu2 %v251_v62, %s1669_s6  ;;  %v491_v34 = vpop.f32.mrf.mxu3 }
 0x136   :  { %v415_v36 = vpop.f32.mrf.mxu1 }
 0x18d   :  { %v254_v5 = vpop.permute.xlu2 %253 }
 0x18e   :  { %v1825_v10 = vadd.f32 %v254_v5, %v246_v0 }
 0x190   :  { %1372 = vtanh.f32 %v1825_v10 }
 0x196   :  { %v1373_v12 = vpop.eup %1372 }
 0x197   :  { %259 = vrot.lane.b32.xlu1 %v1373_v12, %s1661_s17 }
 0x19d   :  { %v357_v14 = vpop.permute.xlu1 %356 }
 0x19e   :  { %v1829_v15 = vadd.f32 %v357_v14, %v349_v13 }
 0x1a0   :  { %1374 = vtanh.f32 %v1829_v15 }
 0x1a6   :  { %v1375_v16 = vpop.eup %1374 }
 0x1a7   :  { %362 = vrot.lane.b32.xlu0 %v1375_v16, %s1661_s17 }
 0x209   :  { %v260_v18 = vpop.permute.xlu1 %259 }
 0x20a   :  { %v262_v20 = vmul.f32 %v260_v18, %v239_v60 }
 0x20c   :  { %v1836_v21 = vpack.c.bf16 %v262_v20, %v262_v20 }
 0x20e   :  { %v381_v22 = vunpack.c.l.b16 %v1836_v21 }
 0x210   :  { %v382_v23 = vpack.c.b16 %v381_v22, %v381_v22 }
 0x212   :  { %383 = vrot.lane.b32.xlu0 %v382_v23, %s1669_s6 }
 0x219   :  { %v363_v24 = vpop.permute.xlu0 %362 }
 0x21a   :  { %v365_v26 = vmul.f32 %v363_v24, %v342_v52 }
 0x21c   :  { %v1840_v27 = vpack.c.bf16 %v365_v26, %v365_v26 }
 0x21e   :  { %v457_v28 = vunpack.c.l.b16 %v1840_v27 }
 0x220   :  { %v458_v29 = vpack.c.b16 %v457_v28, %v457_v28 }
 0x222   :  { %459 = vrot.lane.b32.xlu2 %v458_v29, %s1669_s6 }
 0x27c   :  { %v460_v31 = vpop.permute.xlu2 %459 }
 0x27d   :  { %1310 = vmatmul.msk.bf16.vlgmr.msrb.gmra.mxu2 %vm132_vm0, %v460_v31 }
 0x27e   :  { %802 = vmatpush.bf16.msrb.mxu2 %v1763_v1 }
 0x282   :  { %803 = vmatpush.bf16.msrb.mxu2 %v1767_v3 }
 0x284   :  { %v384_v32 = vpop.permute.xlu0 %383 }
 0x285   :  { %1307 = vmatmul.msk.bf16.vlgmr.msrb.gmra.mxu0 %vm132_vm0, %v384_v32 }
 0x286   :  { %726 = vmatpush.bf16.msrb.mxu0 %v1773_v6 }
 0x28a   :  { %727 = vmatpush.bf16.msrb.mxu0 %v1777_v8 }
 0x300   :  { %v473_v37 = vpop.f32.mrf.mxu2 }
 0x301   :  { %v490_v38 = vadd.f32 %v489_v33, %v473_v37 }
 0x302   :  { %v397_v39 = vpop.f32.mrf.mxu0 }
 0x303   :  { %v493_v40 = vadd.f32 %v1812_v19, %v490_v38  ;;  %v414_v41 = vadd.f32 %v413_v35, %v397_v39 }
 0x305   :  { %1376 = vtanh.f32 %v493_v40  ;;  %v417_v42 = vadd.f32 %v1818_v25, %v414_v41  ;;  %v1312_v50 = vmul.f32 -1.442695, %v493_v40 }
 0x307   :  { %1378 = vtanh.f32 %v417_v42  ;;  %v1309_v47 = vmul.f32 -1.442695, %v417_v42 }
 0x308   :  { %v475_v43 = vpop.f32.mrf.mxu2 }
 0x309   :  { %1380 = vpow2.f32 %v1309_v47  ;;  %v546_v43 = vld [vmem:[#allocation6 + $0x8] sm:$0xf] }
 0x30a   :  { %v399_v44 = vpop.f32.mrf.mxu0  ;;  %1314 = vmatmul.msk.bf16.vlgmr.msra.gmra.mxu1 %vm132_vm0, %v546_v43 }
 0x30b   :  { %v1377_v45 = vpop.eup %1376  ;;  %v622_v44 = vld [vmem:[#allocation9 + $0x8] sm:$0xf]  ;;  %908 = vmatpush.bf16.msra.mxu1 %v1775_v7 }
 0x30c   :  { %516 = vrot.lane.b32.xlu1 %v1377_v45, %s1661_s17  ;;  %1317 = vmatmul.msk.bf16.vlgmr.msra.gmra.mxu3 %vm132_vm0, %v622_v44 }
 0x30d   :  { %v1379_v46 = vpop.eup %1378  ;;  %984 = vmatpush.bf16.msra.mxu3 %v1765_v2 }
 0x30e   :  { %440 = vrot.lane.b32.xlu2 %v1379_v46, %s1661_s17 }
 0x30f   :  { %v1381_v48 = vpop.eup %1380  ;;  %909 = vmatpush.bf16.msra.mxu1 %v1779_v9 }
 0x310   :  { %v421_v49 = vadd.f32 1.0, %v1381_v48 }
 0x311   :  { %985 = vmatpush.bf16.msra.mxu3 %v1769_v4 }
 0x312   :  { %1382 = vrcp.f32 %v421_v49  ;;  %v433_v58 = vand.u32 2147483648, %v421_v49  ;;  %vm427_vm10 = vweird.f32 %v421_v49  ;;  %v431_v59 = vand.u32 2147483647, %v421_v49 }
 0x313   :  { %1384 = vpow2.f32 %v1312_v50 }
 0x314   :  { %v434_v61 = vor.u32 1.1754944e-38, %v433_v58  ;;  %vm432_vm12 = vcmp.eq.f32.partialorder %v431_v59, 8.507059e+37 }
 0x318   :  { %v1383_v51 = vpop.eup %1382 }
 0x319   :  { %v423_v52 = vmul.f32 %v1383_v51, %v421_v49  ;;  %v1385_v54 = vpop.eup %1384  ;;  %vm428_vm9 = vweird.f32 %v1383_v51 }
 0x31a   :  { %v497_v55 = vadd.f32 1.0, %v1385_v54  ;;  %vm429_vm11 = vmor %vm427_vm10, %vm428_vm9 }
 0x31b   :  { %v424_v53 = vsub.f32 1.0, %v423_v52 }
 0x31c   :  { %1386 = vrcp.f32 %v497_v55  ;;  %v509_v16 = vand.u32 2147483648, %v497_v55  ;;  %vm503_vm14 = vweird.f32 %v497_v55  ;;  %v507_v17 = vand.u32 2147483647, %v497_v55 }
 0x31d   :  { %v425_v56 = vmul.f32 %v1383_v51, %v424_v53 }
 0x31e   :  { %v510_v20 = vor.u32 1.1754944e-38, %v509_v16  ;;  %vm508_vm1 = vcmp.eq.f32.partialorder %v507_v17, 8.507059e+37 }
 0x31f   :  { %v426_v57 = vadd.f32 %v1383_v51, %v425_v56 }
 0x321   :  { %v430_v60 = vsel %vm429_vm11, %v1383_v51, %v426_v57 }
 0x322   :  { %v1387_v62 = vpop.eup %1386  ;;  %v435_v0 = vsel %vm432_vm12, %v434_v61, %v430_v60 }
 0x323   :  { %v499_v11 = vmul.f32 %v1387_v62, %v497_v55  ;;  %vm504_vm13 = vweird.f32 %v1387_v62  ;;  %v438_v26 = vmul.f32 %v435_v0, %v1825_v10 }
 0x324   :  { %vm505_vm15 = vmor %vm503_vm14, %vm504_vm13 }
 0x325   :  { %v500_v12 = vsub.f32 1.0, %v499_v11 }
 0x327   :  { %v501_v13 = vmul.f32 %v1387_v62, %v500_v12 }
 0x329   :  { %v502_v14 = vadd.f32 %v1387_v62, %v501_v13 }
 0x32b   :  { %v506_v18 = vsel %vm505_vm15, %v1387_v62, %v502_v14 }
 0x32c   :  { %v511_v22 = vsel %vm508_vm1, %v510_v20, %v506_v18 }
 0x32d   :  { %v514_v31 = vmul.f32 %v511_v22, %v1829_v15 }
 0x368   :  { %v441_v63 = vpop.permute.xlu2 %440 }
 0x369   :  { %v443_v5 = vmul.f32 %v441_v63, %v435_v0 }
 0x36b   :  { %445 = vrot.lane.b32.xlu1 %v443_v5, %s1669_s6 }
 0x37e   :  { %v517_v23 = vpop.permute.xlu1 %516 }
 0x37f   :  { %v519_v24 = vmul.f32 %v517_v23, %v511_v22 }
 0x381   :  { %521 = vrot.lane.b32.xlu0 %v519_v24, %s1669_s6 }
 0x387   :  { %v579_v47 = vpop.f32.mrf.mxu1 }
 0x38f   :  { %v581_v48 = vpop.f32.mrf.mxu1  ;;  %v655_v49 = vpop.f32.mrf.mxu3 }
 0x397   :  { %v657_v50 = vpop.f32.mrf.mxu3 }
 0x3dd   :  { %v446_v28 = vpop.permute.xlu1 %445 }
 0x3de   :  { %v1860_v29 = vadd.f32 %v446_v28, %v438_v26 }
 0x3e0   :  { %1388 = vtanh.f32 %v1860_v29 }
 0x3e6   :  { %v1389_v30 = vpop.eup %1388 }
 0x3e7   :  { %451 = vrot.lane.b32.xlu0 %v1389_v30, %s1661_s17 }
 0x3f3   :  { %v522_v32 = vpop.permute.xlu0 %521 }
 0x3f4   :  { %v1865_v33 = vadd.f32 %v522_v32, %v514_v31 }
 0x3f6   :  { %1390 = vtanh.f32 %v1865_v33 }
 0x3fc   :  { %v1391_v34 = vpop.eup %1390 }
 0x3fd   :  { %527 = vrot.lane.b32.xlu2 %v1391_v34, %s1661_s17 }
 0x457   :  { %v528_v35 = vpop.permute.xlu2 %527 }
 0x458   :  { %v530_v10 = vmul.f32 %v528_v35, %v511_v22 }
 0x459   :  { %v452_v37 = vpop.permute.xlu0 %451 }
 0x45a   :  { %v1869_v36 = vpack.c.bf16 %v530_v10, %v530_v10  ;;  %v454_v38 = vmul.f32 %v452_v37, %v435_v0 }
 0x45c   :  { %v623_v39 = vunpack.c.l.b16 %v1869_v36  ;;  %v1872_v40 = vpack.c.bf16 %v454_v38, %v454_v38 }
 0x45e   :  { %v624_v41 = vpack.c.b16 %v623_v39, %v623_v39  ;;  %v547_v15 = vunpack.c.l.b16 %v1872_v40 }
 0x460   :  { %625 = vrot.lane.b32.xlu1 %v624_v41, %s1669_s6  ;;  %v548_v42 = vpack.c.b16 %v547_v15, %v547_v15 }
 0x462   :  { %549 = vrot.lane.b32.xlu2 %v548_v42, %s1669_s6 }
 0x4bc   :  { %v550_v45 = vpop.permute.xlu2 %549 }
 0x4bd   :  { %1313 = vmatmul.msk.bf16.vlgmr.msra.gmra.mxu0 %vm132_vm0, %v550_v45 }
 0x4be   :  { %892 = vmatpush.bf16.msra.mxu0 %v1773_v6 }
 0x4c2   :  { %893 = vmatpush.bf16.msra.mxu0 %v1777_v8 }
 0x4d2   :  { %v626_v46 = vpop.permute.xlu1 %625 }
 0x4d3   :  { %1316 = vmatmul.msk.bf16.vlgmr.msra.gmra.mxu2 %vm132_vm0, %v626_v46 }
 0x4d4   :  { %968 = vmatpush.bf16.msra.mxu2 %v1763_v1 }
 0x4d8   :  { %969 = vmatpush.bf16.msra.mxu2 %v1767_v3 }
 0x53a   :  { %v563_v51 = vpop.f32.mrf.mxu0 }
 0x53b   :  { %v580_v52 = vadd.f32 %v579_v47, %v563_v51 }
 0x53d   :  { %v583_v53 = vadd.f32 %v1818_v25, %v580_v52 }
 0x53f   :  { %1392 = vtanh.f32 %v583_v53  ;;  %v1315_v61 = vmul.f32 -1.442695, %v583_v53 }
 0x542   :  { %v565_v54 = vpop.f32.mrf.mxu0 }
 0x545   :  { %v1393_v55 = vpop.eup %1392 }
 0x546   :  { %606 = vrot.lane.b32.xlu1 %v1393_v55, %s1661_s17 }
 0x556   :  { %v639_v56 = vpop.f32.mrf.mxu2 }
 0x557   :  { %v656_v57 = vadd.f32 %v655_v49, %v639_v56 }
 0x559   :  { %v659_v58 = vadd.f32 %v1812_v19, %v656_v57 }
 0x55b   :  { %1394 = vtanh.f32 %v659_v58  ;;  %v1318_v11 = vmul.f32 -1.442695, %v659_v58 }
 0x55c   :  { %1396 = vpow2.f32 %v1315_v61 }
 0x55e   :  { %v641_v59 = vpop.f32.mrf.mxu2 }
 0x55f   :  { %v712_v59 = vld [vmem:[#allocation6 + $0xc] sm:$0xf] }
 0x560   :  { %1320 = vmatmul.msk.bf16.vlgmr.msrb.gmra.mxu1 %vm132_vm0, %v712_v59 }
 0x561   :  { %v1395_v60 = vpop.eup %1394  ;;  %1074 = vmatpush.bf16.msrb.mxu1 %v1775_v7 }
 0x562   :  { %682 = vrot.lane.b32.xlu0 %v1395_v60, %s1661_s17  ;;  %v1397_v62 = vpop.eup %1396  ;;  %v788_v60 = vld [vmem:[#allocation9 + $0xc] sm:$0xf] }
 0x563   :  { %v587_v63 = vadd.f32 1.0, %v1397_v62  ;;  %1323 = vmatmul.msk.bf16.vlgmr.msrb.gmra.mxu3 %vm132_vm0, %v788_v60 }
 0x564   :  { %1150 = vmatpush.bf16.msrb.mxu3 %v1765_v2 }
 0x565   :  { %1398 = vrcp.f32 %v587_v63  ;;  %v599_v17 = vand.u32 2147483648, %v587_v63  ;;  %vm593_vm3 = vweird.f32 %v587_v63  ;;  %v597_v20 = vand.u32 2147483647, %v587_v63  ;;  %1075 = vmatpush.bf16.msrb.mxu1 %v1779_v9 }
 0x566   :  { %1400 = vpow2.f32 %v1318_v11 }
 0x567   :  { %v600_v23 = vor.u32 1.1754944e-38, %v599_v17  ;;  %vm598_vm5 = vcmp.eq.f32.partialorder %v597_v20, 8.507059e+37 }
 0x568   :  { %1151 = vmatpush.bf16.msrb.mxu3 %v1769_v4 }
 0x56b   :  { %v1399_v0 = vpop.eup %1398 }
 0x56c   :  { %v589_v5 = vmul.f32 %v1399_v0, %v587_v63  ;;  %v1401_v14 = vpop.eup %1400  ;;  %vm594_vm2 = vweird.f32 %v1399_v0 }
 0x56d   :  { %v663_v18 = vadd.f32 1.0, %v1401_v14  ;;  %vm595_vm4 = vmor %vm593_vm3, %vm594_vm2 }
 0x56e   :  { %v590_v12 = vsub.f32 1.0, %v589_v5 }
 0x56f   :  { %1402 = vrcp.f32 %v663_v18  ;;  %v675_v10 = vand.u32 2147483648, %v663_v18  ;;  %vm669_vm7 = vweird.f32 %v663_v18  ;;  %v673_v37 = vand.u32 2147483647, %v663_v18 }
 0x570   :  { %v591_v13 = vmul.f32 %v1399_v0, %v590_v12 }
 0x571   :  { %v676_v39 = vor.u32 1.1754944e-38, %v675_v10  ;;  %vm674_vm9 = vcmp.eq.f32.partialorder %v673_v37, 8.507059e+37 }
 0x572   :  { %v592_v16 = vadd.f32 %v1399_v0, %v591_v13 }
 0x574   :  { %v596_v22 = vsel %vm595_vm4, %v1399_v0, %v592_v16 }
 0x575   :  { %v601_v26 = vsel %vm598_vm5, %v600_v23, %v596_v22  ;;  %v1403_v30 = vpop.eup %1402 }
 0x576   :  { %v665_v31 = vmul.f32 %v1403_v30, %v663_v18  ;;  %vm670_vm6 = vweird.f32 %v1403_v30  ;;  %v604_v43 = vmul.f32 %v601_v26, %v1860_v29 }
 0x577   :  { %vm671_vm8 = vmor %vm669_vm7, %vm670_vm6 }
 0x578   :  { %v666_v32 = vsub.f32 1.0, %v665_v31 }
 0x57a   :  { %v667_v34 = vmul.f32 %v1403_v30, %v666_v32 }
 0x57c   :  { %v668_v35 = vadd.f32 %v1403_v30, %v667_v34 }
 0x57e   :  { %v672_v38 = vsel %vm671_vm8, %v1403_v30, %v668_v35 }
 0x57f   :  { %v677_v41 = vsel %vm674_vm9, %v676_v39, %v672_v38 }
 0x580   :  { %v680_v46 = vmul.f32 %v677_v41, %v1865_v33 }
 0x5b8   :  { %v607_v24 = vpop.permute.xlu1 %606 }
 0x5b9   :  { %v609_v28 = vmul.f32 %v607_v24, %v601_v26 }
 0x5bb   :  { %611 = vrot.lane.b32.xlu0 %v609_v28, %s1669_s6 }
 0x5d4   :  { %v683_v15 = vpop.permute.xlu0 %682 }
 0x5d5   :  { %v685_v42 = vmul.f32 %v683_v15, %v677_v41 }
 0x5d7   :  { %687 = vrot.lane.b32.xlu2 %v685_v42, %s1669_s6 }
 0x5dd   :  { %v745_v7 = vpop.f32.mrf.mxu1 }
 0x5e5   :  { %v747_v2 = vpop.f32.mrf.mxu1 }
 0x5e6   :  { %v821_v63 = vpop.f32.mrf.mxu3 }
 0x5ee   :  { %v823_v9 = vpop.f32.mrf.mxu3 }
 0x62d   :  { %v612_v44 = vpop.permute.xlu0 %611 }
 0x62e   :  { %v1896_v45 = vadd.f32 %v612_v44, %v604_v43 }
 0x630   :  { %1404 = vtanh.f32 %v1896_v45 }
 0x631   :  { %v688_v47 = vpop.permute.xlu2 %687 }
 0x632   :  { %v1900_v48 = vadd.f32 %v688_v47, %v680_v46 }
 0x634   :  { %1406 = vtanh.f32 %v1900_v48 }
 0x636   :  { %v1405_v49 = vpop.eup %1404 }
 0x637   :  { %617 = vrot.lane.b32.xlu2 %v1405_v49, %s1661_s17 }
 0x63a   :  { %v1407_v50 = vpop.eup %1406 }
 0x63b   :  { %693 = vrot.lane.b32.xlu1 %v1407_v50, %s1661_s17 }
 0x691   :  { %v618_v51 = vpop.permute.xlu2 %617 }
 0x692   :  { %v620_v29 = vmul.f32 %v618_v51, %v601_v26 }
 0x694   :  { %v1905_v52 = vpack.c.bf16 %v620_v29, %v620_v29 }
 0x696   :  { %v713_v53 = vunpack.c.l.b16 %v1905_v52 }
 0x698   :  { %v714_v33 = vpack.c.b16 %v713_v53, %v713_v53 }
 0x69a   :  { %715 = vrot.lane.b32.xlu1 %v714_v33, %s1669_s6 }
 0x6ad   :  { %v694_v54 = vpop.permute.xlu1 %693 }
 0x6ae   :  { %v696_v55 = vmul.f32 %v694_v54, %v677_v41 }
 0x6b0   :  { %v1909_v56 = vpack.c.bf16 %v696_v55, %v696_v55 }
 0x6b2   :  { %v789_v57 = vunpack.c.l.b16 %v1909_v56 }
 0x6b4   :  { %v790_v58 = vpack.c.b16 %v789_v57, %v789_v57 }
 0x6b6   :  { %791 = vrot.lane.b32.xlu0 %v790_v58, %s1669_s6 }
 0x70c   :  { %v716_v61 = vpop.permute.xlu1 %715 }
 0x70d   :  { %1319 = vmatmul.msk.bf16.vlgmr.msrb.gmra.mxu0 %vm132_vm0, %v716_v61 }
 0x70e   :  { %1058 = vmatpush.bf16.msrb.mxu0 %v1773_v6 }
 0x712   :  { %1059 = vmatpush.bf16.msrb.mxu0 %v1777_v8 }
 0x728   :  { %v792_v62 = vpop.permute.xlu0 %791 }
 0x729   :  { %1322 = vmatmul.msk.bf16.vlgmr.msrb.gmra.mxu2 %vm132_vm0, %v792_v62 }
 0x72a   :  { %1134 = vmatpush.bf16.msrb.mxu2 %v1763_v1 }
 0x72e   :  { %1135 = vmatpush.bf16.msrb.mxu2 %v1767_v3 }
 0x78a   :  { %v729_v0 = vpop.f32.mrf.mxu0 }
 0x78b   :  { %v746_v4 = vadd.f32 %v745_v7, %v729_v0 }
 0x78d   :  { %v749_v5 = vadd.f32 %v1818_v25, %v746_v4 }
 0x78f   :  { %1408 = vtanh.f32 %v749_v5  ;;  %v1321_v14 = vmul.f32 -1.442695, %v749_v5  ;;  %v878_v5 = vld [vmem:[#allocation6 + $0x10] sm:$0xf] }
 0x790   :  { %1326 = vmatmul.msk.bf16.vlgmr.msra.gmra.mxu1 %vm132_vm0, %v878_v5 }
 0x792   :  { %v731_v11 = vpop.f32.mrf.mxu0 }
 0x793   :  { %v954_v11 = vld [vmem:[#allocation9 + $0x10] sm:$0xf] }
 0x794   :  { %1329 = vmatmul.msk.bf16.vlgmr.msra.gmra.mxu3 %vm132_vm0, %v954_v11 }
 0x795   :  { %v1409_v6 = vpop.eup %1408 }
 0x796   :  { %772 = vrot.lane.b32.xlu0 %v1409_v6, %s1661_s17 }
 0x7ac   :  { %v805_v8 = vpop.f32.mrf.mxu2 }
 0x7ad   :  { %v822_v12 = vadd.f32 %v821_v63, %v805_v8 }
 0x7af   :  { %v825_v13 = vadd.f32 %v1812_v19, %v822_v12 }
 0x7b1   :  { %1410 = vtanh.f32 %v825_v13  ;;  %v1324_v16 = vmul.f32 -1.442695, %v825_v13 }
 0x7b2   :  { %1412 = vpow2.f32 %v1321_v14 }
 0x7b3   :  { %1414 = vpow2.f32 %v1324_v16 }
 0x7b4   :  { %v807_v1 = vpop.f32.mrf.mxu2 }
 0x7b7   :  { %v1411_v3 = vpop.eup %1410 }
 0x7b8   :  { %848 = vrot.lane.b32.xlu2 %v1411_v3, %s1661_s17  ;;  %v1413_v17 = vpop.eup %1412 }
 0x7b9   :  { %v753_v18 = vadd.f32 1.0, %v1413_v17  ;;  %v1415_v20 = vpop.eup %1414 }
 0x7ba   :  { %v829_v22 = vadd.f32 1.0, %v1415_v20 }
 0x7bb   :  { %1416 = vrcp.f32 %v753_v18  ;;  %v765_v34 = vand.u32 2147483648, %v753_v18  ;;  %vm759_vm11 = vweird.f32 %v753_v18  ;;  %v763_v10 = vand.u32 2147483647, %v753_v18 }
 0x7bc   :  { %1418 = vrcp.f32 %v829_v22  ;;  %v841_v44 = vand.u32 2147483648, %v829_v22  ;;  %vm835_vm15 = vweird.f32 %v829_v22  ;;  %v839_v46 = vand.u32 2147483647, %v829_v22 }
 0x7bd   :  { %v766_v38 = vor.u32 1.1754944e-38, %v765_v34  ;;  %vm764_vm13 = vcmp.eq.f32.partialorder %v763_v10, 8.507059e+37 }
 0x7be   :  { %v842_v49 = vor.u32 1.1754944e-38, %v841_v44  ;;  %vm840_vm2 = vcmp.eq.f32.partialorder %v839_v46, 8.507059e+37 }
 0x7c1   :  { %v1417_v23 = vpop.eup %1416 }
 0x7c2   :  { %v755_v24 = vmul.f32 %v1417_v23, %v753_v18  ;;  %v1419_v28 = vpop.eup %1418  ;;  %vm760_vm10 = vweird.f32 %v1417_v23 }
 0x7c3   :  { %v831_v31 = vmul.f32 %v1419_v28, %v829_v22  ;;  %vm761_vm12 = vmor %vm759_vm11, %vm760_vm10  ;;  %vm836_vm14 = vweird.f32 %v1419_v28 }
 0x7c4   :  { %v756_v26 = vsub.f32 1.0, %v755_v24  ;;  %vm837_vm1 = vmor %vm835_vm15, %vm836_vm14 }
 0x7c5   :  { %v832_v35 = vsub.f32 1.0, %v831_v31 }
 0x7c6   :  { %v757_v30 = vmul.f32 %v1417_v23, %v756_v26 }
 0x7c7   :  { %v833_v39 = vmul.f32 %v1419_v28, %v832_v35 }
 0x7c8   :  { %v758_v32 = vadd.f32 %v1417_v23, %v757_v30 }
 0x7c9   :  { %v834_v43 = vadd.f32 %v1419_v28, %v833_v39 }
 0x7ca   :  { %v762_v37 = vsel %vm761_vm12, %v1417_v23, %v758_v32 }
 0x7cb   :  { %v767_v15 = vsel %vm764_vm13, %v766_v38, %v762_v37  ;;  %v838_v47 = vsel %vm837_vm1, %v1419_v28, %v834_v43 }
 0x7cc   :  { %v843_v50 = vsel %vm840_vm2, %v842_v49, %v838_v47  ;;  %v770_v53 = vmul.f32 %v767_v15, %v1896_v45 }
 0x7cd   :  { %v846_v57 = vmul.f32 %v843_v50, %v1900_v48 }
 0x808   :  { %v773_v41 = vpop.permute.xlu0 %772 }
 0x809   :  { %v775_v42 = vmul.f32 %v773_v41, %v767_v15 }
 0x80b   :  { %777 = vrot.lane.b32.xlu2 %v775_v42, %s1669_s6 }
 0x80d   :  { %v911_v12 = vpop.f32.mrf.mxu1 }
 0x812   :  { %v849_v51 = vpop.permute.xlu2 %848 }
 0x813   :  { %v851_v29 = vmul.f32 %v849_v51, %v843_v50 }
 0x815   :  { %853 = vrot.lane.b32.xlu1 %v851_v29, %s1669_s6  ;;  %v913_v1 = vpop.f32.mrf.mxu1 }
 0x817   :  { %v987_v13 = vpop.f32.mrf.mxu3 }
 0x81f   :  { %v989_v3 = vpop.f32.mrf.mxu3 }
 0x865   :  { %v778_v33 = vpop.permute.xlu2 %777 }
 0x866   :  { %v1932_v54 = vadd.f32 %v778_v33, %v770_v53 }
 0x868   :  { %1420 = vtanh.f32 %v1932_v54 }
 0x86e   :  { %v1421_v55 = vpop.eup %1420 }
 0x86f   :  { %783 = vrot.lane.b32.xlu1 %v1421_v55, %s1661_s17 }
 0x887   :  { %v854_v58 = vpop.permute.xlu1 %853 }
 0x888   :  { %v1937_v59 = vadd.f32 %v854_v58, %v846_v57 }
 0x88a   :  { %1422 = vtanh.f32 %v1937_v59 }
 0x890   :  { %v1423_v60 = vpop.eup %1422 }
 0x891   :  { %859 = vrot.lane.b32.xlu0 %v1423_v60, %s1661_s17 }
 0x8e1   :  { %v784_v61 = vpop.permute.xlu1 %783 }
 0x8e2   :  { %v786_v45 = vmul.f32 %v784_v61, %v767_v15 }
 0x8e4   :  { %v1941_v62 = vpack.c.bf16 %v786_v45, %v786_v45 }
 0x8e6   :  { %v879_v7 = vunpack.c.l.b16 %v1941_v62 }
 0x8e8   :  { %v880_v2 = vpack.c.b16 %v879_v7, %v879_v7 }
 0x8ea   :  { %881 = vrot.lane.b32.xlu0 %v880_v2, %s1669_s6 }
 0x903   :  { %v860_v63 = vpop.permute.xlu0 %859 }
 0x904   :  { %v862_v9 = vmul.f32 %v860_v63, %v843_v50 }
 0x906   :  { %v1945_v48 = vpack.c.bf16 %v862_v9, %v862_v9 }
 0x908   :  { %v955_v0 = vunpack.c.l.b16 %v1945_v48 }
 0x90a   :  { %v956_v4 = vpack.c.b16 %v955_v0, %v955_v0 }
 0x90c   :  { %957 = vrot.lane.b32.xlu2 %v956_v4, %s1669_s6 }
 0x95c   :  { %v882_v6 = vpop.permute.xlu0 %881 }
 0x95d   :  { %1325 = vmatmul.msk.bf16.vlgmr.msra.gmra.mxu0 %vm132_vm0, %v882_v6 }
 0x966   :  { %v958_v8 = vpop.permute.xlu2 %957 }
 0x967   :  { %1328 = vmatmul.msk.bf16.vlgmr.msra.gmra.mxu2 %vm132_vm0, %v958_v8 }
 0x9da   :  { %v895_v14 = vpop.f32.mrf.mxu0 }
 0x9db   :  { %v912_v16 = vadd.f32 %v911_v12, %v895_v14 }
 0x9dd   :  { %v915_v17 = vadd.f32 %v1818_v25, %v912_v16 }
 0x9df   :  { %1424 = vtanh.f32 %v915_v17  ;;  %v1327_v30 = vmul.f32 -1.442695, %v915_v17 }
 0x9e2   :  { %v897_v18 = vpop.f32.mrf.mxu0 }
 0x9e5   :  { %v1425_v20 = vpop.eup %1424 }
 0x9e6   :  { %938 = vrot.lane.b32.xlu2 %v1425_v20, %s1661_s17  ;;  %v1044_v20 = vld [vmem:[#allocation6 + $0x14] sm:$0xf] }
 0x9e7   :  { %1332 = vmatmul.msk.bf16.vlgmr.msrb.gmra.mxu1 %vm132_vm0, %v1044_v20 }
 0x9ea   :  { %v971_v22 = vpop.f32.mrf.mxu2 }
 0x9eb   :  { %v988_v23 = vadd.f32 %v987_v13, %v971_v22  ;;  %v1120_v22 = vld [vmem:[#allocation9 + $0x14] sm:$0xf] }
 0x9ec   :  { %1335 = vmatmul.msk.bf16.vlgmr.msrb.gmra.mxu3 %vm132_vm0, %v1120_v22 }
 0x9ed   :  { %v991_v24 = vadd.f32 %v1812_v19, %v988_v23 }
 0x9ef   :  { %1426 = vtanh.f32 %v991_v24  ;;  %v1330_v39 = vmul.f32 -1.442695, %v991_v24 }
 0x9f0   :  { %1428 = vpow2.f32 %v1327_v30 }
 0x9f2   :  { %v973_v26 = vpop.f32.mrf.mxu2 }
 0x9f5   :  { %v1427_v28 = vpop.eup %1426 }
 0x9f6   :  { %1014 = vrot.lane.b32.xlu1 %v1427_v28, %s1661_s17  ;;  %v1429_v31 = vpop.eup %1428 }
 0x9f7   :  { %v919_v32 = vadd.f32 1.0, %v1429_v31 }
 0x9f9   :  { %1430 = vrcp.f32 %v919_v32  ;;  %v931_v41 = vand.u32 2147483648, %v919_v32  ;;  %vm925_vm4 = vweird.f32 %v919_v32  ;;  %v929_v15 = vand.u32 2147483647, %v919_v32 }
 0x9fa   :  { %1432 = vpow2.f32 %v1330_v39 }
 0x9fb   :  { %v932_v43 = vor.u32 1.1754944e-38, %v931_v41  ;;  %vm930_vm6 = vcmp.eq.f32.partialorder %v929_v15, 8.507059e+37 }
 0x9ff   :  { %v1431_v34 = vpop.eup %1430 }
 0xa00   :  { %v921_v35 = vmul.f32 %v1431_v34, %v919_v32  ;;  %vm926_vm3 = vweird.f32 %v1431_v34  ;;  %v1433_v49 = vpop.eup %1432 }
 0xa01   :  { %vm927_vm5 = vmor %vm925_vm4, %vm926_vm3  ;;  %v995_v50 = vadd.f32 1.0, %v1433_v49  ;;  %vm371_vm4 = vcmask 257024  }
 0xa02   :  { %v922_v10 = vsub.f32 1.0, %v921_v35 }
 0xa03   :  { %1434 = vrcp.f32 %v995_v50  ;;  %v1007_v57 = vand.u32 2147483648, %v995_v50  ;;  %vm1001_vm8 = vweird.f32 %v995_v50  ;;  %v1005_v58 = vand.u32 2147483647, %v995_v50 }
 0xa04   :  { %v923_v37 = vmul.f32 %v1431_v34, %v922_v10 }
 0xa05   :  { %v1008_v61 = vor.u32 1.1754944e-38, %v1007_v57  ;;  %vm1006_vm10 = vcmp.eq.f32.partialorder %v1005_v58, 8.507059e+37 }
 0xa06   :  { %v924_v38 = vadd.f32 %v1431_v34, %v923_v37 }
 0xa08   :  { %v928_v42 = vsel %vm927_vm5, %v1431_v34, %v924_v38 }
 0xa09   :  { %v933_v46 = vsel %vm930_vm6, %v932_v43, %v928_v42  ;;  %v1435_v51 = vpop.eup %1434 }
 0xa0a   :  { %v997_v29 = vmul.f32 %v1435_v51, %v995_v50  ;;  %vm1002_vm7 = vweird.f32 %v1435_v51  ;;  %v936_v63 = vmul.f32 %v933_v46, %v1932_v54 }
 0xa0b   :  { %vm1003_vm9 = vmor %vm1001_vm8, %vm1002_vm7 }
 0xa0c   :  { %v998_v53 = vsub.f32 1.0, %v997_v29 }
 0xa0e   :  { %v999_v33 = vmul.f32 %v1435_v51, %v998_v53 }
 0xa10   :  { %v1000_v55 = vadd.f32 %v1435_v51, %v999_v33 }
 0xa12   :  { %v1004_v60 = vsel %vm1003_vm9, %v1435_v51, %v1000_v55 }
 0xa13   :  { %v1009_v45 = vsel %vm1006_vm10, %v1008_v61, %v1004_v60 }
 0xa14   :  { %v1012_v5 = vmul.f32 %v1009_v45, %v1937_v59 }
 0xa40   :  { %v939_v44 = vpop.permute.xlu2 %938 }
 0xa41   :  { %v941_v47 = vmul.f32 %v939_v44, %v933_v46 }
 0xa43   :  { %943 = vrot.lane.b32.xlu1 %v941_v47, %s1669_s6 }
 0xa64   :  { %v1077_v26 = vpop.f32.mrf.mxu1 }
 0xa68   :  { %v1015_v7 = vpop.permute.xlu1 %1014 }
 0xa69   :  { %v1017_v2 = vmul.f32 %v1015_v7, %v1009_v45 }
 0xa6b   :  { %1019 = vrot.lane.b32.xlu0 %v1017_v2, %s1669_s6 }
 0xa6c   :  { %v1079_v28 = vpop.f32.mrf.mxu1 }
 0xa6f   :  { %v1153_v30 = vpop.f32.mrf.mxu3 }
 0xa77   :  { %v1155_v31 = vpop.f32.mrf.mxu3 }
 0xab5   :  { %v944_v9 = vpop.permute.xlu1 %943 }
 0xab6   :  { %v1960_v0 = vadd.f32 %v944_v9, %v936_v63 }
 0xab8   :  { %1436 = vtanh.f32 %v1960_v0 }
 0xabe   :  { %v1437_v4 = vpop.eup %1436 }
 0xabf   :  { %949 = vrot.lane.b32.xlu0 %v1437_v4, %s1661_s17 }
 0xadd   :  { %v1020_v11 = vpop.permute.xlu0 %1019 }
 0xade   :  { %v1965_v6 = vadd.f32 %v1020_v11, %v1012_v5 }
 0xae0   :  { %1438 = vtanh.f32 %v1965_v6 }
 0xae6   :  { %v1439_v8 = vpop.eup %1438 }
 0xae7   :  { %1025 = vrot.lane.b32.xlu2 %v1439_v8, %s1661_s17 }
 0xb31   :  { %v950_v12 = vpop.permute.xlu0 %949 }
 0xb32   :  { %v952_v54 = vmul.f32 %v950_v12, %v933_v46 }
 0xb34   :  { %v1969_v13 = vpack.c.bf16 %v952_v54, %v952_v54 }
 0xb36   :  { %v1045_v1 = vunpack.c.l.b16 %v1969_v13 }
 0xb38   :  { %v1046_v3 = vpack.c.b16 %v1045_v1, %v1045_v1 }
 0xb3a   :  { %1047 = vrot.lane.b32.xlu2 %v1046_v3, %s1669_s6 }
 0xb41   :  { %v1026_v14 = vpop.permute.xlu2 %1025 }
 0xb42   :  { %v1028_v16 = vmul.f32 %v1026_v14, %v1009_v45 }
 0xb44   :  { %v1973_v59 = vpack.c.bf16 %v1028_v16, %v1028_v16 }
 0xb46   :  { %v1121_v17 = vunpack.c.l.b16 %v1973_v59 }
 0xb48   :  { %v1122_v18 = vpack.c.b16 %v1121_v17, %v1121_v17 }
 0xb4a   :  { %1123 = vrot.lane.b32.xlu1 %v1122_v18, %s1669_s6 }
 0xb94   :  { %v1048_v23 = vpop.permute.xlu2 %1047 }
 0xb95   :  { %1331 = vmatmul.msk.bf16.vlgmr.msrb.gmra.mxu0 %vm132_vm0, %v1048_v23 }
 0xbbc   :  { %v1124_v24 = vpop.permute.xlu1 %1123 }
 0xbbd   :  { %1334 = vmatmul.msk.bf16.vlgmr.msrb.gmra.mxu2 %vm132_vm0, %v1124_v24 }
 0xc12   :  { %v1061_v32 = vpop.f32.mrf.mxu0 }
 0xc13   :  { %v1078_v34 = vadd.f32 %v1077_v26, %v1061_v32 }
 0xc15   :  { %v1081_v35 = vadd.f32 %v1818_v25, %v1078_v34 }
 0xc17   :  { %1440 = vtanh.f32 %v1081_v35  ;;  %v1333_v43 = vmul.f32 -1.442695, %v1081_v35 }
 0xc1a   :  { %v1063_v10 = vpop.f32.mrf.mxu0 }
 0xc1d   :  { %v1441_v37 = vpop.eup %1440 }
 0xc1e   :  { %1104 = vrot.lane.b32.xlu0 %v1441_v37, %s1661_s17 }
 0xc40   :  { %v1137_v38 = vpop.f32.mrf.mxu2 }
 0xc41   :  { %v1154_v39 = vadd.f32 %v1153_v30, %v1137_v38 }
 0xc43   :  { %v1157_v41 = vadd.f32 %v1812_v19, %v1154_v39 }
 0xc45   :  { %1442 = vtanh.f32 %v1157_v41  ;;  %v1336_v55 = vmul.f32 -1.442695, %v1157_v41 }
 0xc46   :  { %1444 = vpow2.f32 %v1333_v43 }
 0xc48   :  { %v1139_v15 = vpop.f32.mrf.mxu2 }
 0xc4b   :  { %v1443_v42 = vpop.eup %1442 }
 0xc4c   :  { %1180 = vrot.lane.b32.xlu1 %v1443_v42, %s1661_s17  ;;  %v1445_v44 = vpop.eup %1444 }
 0xc4d   :  { %v1085_v46 = vadd.f32 1.0, %v1445_v44 }
 0xc4f   :  { %1446 = vrcp.f32 %v1085_v46  ;;  %v1097_v29 = vand.u32 2147483648, %v1085_v46  ;;  %vm1091_vm12 = vweird.f32 %v1085_v46  ;;  %v1095_v53 = vand.u32 2147483647, %v1085_v46 }
 0xc50   :  { %1448 = vpow2.f32 %v1336_v55 }
 0xc51   :  { %v1098_v33 = vor.u32 1.1754944e-38, %v1097_v29  ;;  %vm1096_vm14 = vcmp.eq.f32.partialorder %v1095_v53, 8.507059e+37 }
 0xc55   :  { %v1447_v25 = vpop.eup %1446 }
 0xc56   :  { %v1087_v47 = vmul.f32 %v1447_v25, %v1085_v46  ;;  %vm1092_vm11 = vweird.f32 %v1447_v25  ;;  %v1449_v61 = vpop.eup %1448 }
 0xc57   :  { %vm1093_vm13 = vmor %vm1091_vm12, %vm1092_vm11  ;;  %v1161_v45 = vadd.f32 1.0, %v1449_v61 }
 0xc58   :  { %v1088_v49 = vsub.f32 1.0, %v1087_v47 }
 0xc59   :  { %1450 = vrcp.f32 %v1161_v45  ;;  %v1173_v5 = vand.u32 2147483648, %v1161_v45  ;;  %vm1167_vm1 = vweird.f32 %v1161_v45  ;;  %v1171_v11 = vand.u32 2147483647, %v1161_v45 }
 0xc5a   :  { %v1089_v50 = vmul.f32 %v1447_v25, %v1088_v49 }
 0xc5b   :  { %v1174_v12 = vor.u32 1.1754944e-38, %v1173_v5  ;;  %vm1172_vm3 = vcmp.eq.f32.partialorder %v1171_v11, 8.507059e+37 }
 0xc5c   :  { %v1090_v51 = vadd.f32 %v1447_v25, %v1089_v50 }
 0xc5e   :  { %v1094_v19 = vsel %vm1093_vm13, %v1447_v25, %v1090_v51 }
 0xc5f   :  { %v1099_v58 = vsel %vm1096_vm14, %v1098_v33, %v1094_v19  ;;  %v1451_v7 = vpop.eup %1450 }
 0xc60   :  { %v1163_v2 = vmul.f32 %v1451_v7, %v1161_v45  ;;  %vm1168_vm15 = vweird.f32 %v1451_v7  ;;  %v1102_v14 = vmul.f32 %v1099_v58, %v1960_v0 }
 0xc61   :  { %vm1169_vm2 = vmor %vm1167_vm1, %vm1168_vm15 }
 0xc62   :  { %v1164_v63 = vsub.f32 1.0, %v1163_v2 }
 0xc64   :  { %v1165_v9 = vmul.f32 %v1451_v7, %v1164_v63 }
 0xc66   :  { %v1166_v4 = vadd.f32 %v1451_v7, %v1165_v9 }
 0xc68   :  { %v1170_v8 = vsel %vm1169_vm2, %v1451_v7, %v1166_v4 }
 0xc69   :  { %v1175_v1 = vsel %vm1172_vm3, %v1174_v12, %v1170_v8 }
 0xc90   :  { %v1105_v57 = vpop.permute.xlu0 %1104 }
 0xc91   :  { %v1107_v60 = vmul.f32 %v1105_v57, %v1099_v58 }
 0xc93   :  { %1109 = vrot.lane.b32.xlu2 %v1107_v60, %s1669_s6 }
 0xcbe   :  { %v1181_v54 = vpop.permute.xlu1 %1180 }
 0xcbf   :  { %v1183_v3 = vmul.f32 %v1181_v54, %v1175_v1 }
 0xcc1   :  { %1185 = vrot.lane.b32.xlu0 %v1183_v3, %s1669_s6 }
 0xcc9   :  { %368 = vrot.lane.b32.xlu0 %v1836_v21, %s1669_s6  ;;  %v1178_v21 = vmul.f32 %v1175_v1, %v1965_v6 }
 0xcd1   :  { %540 = vrot.lane.b32.xlu0 %v1869_v36, %s1669_s6 }
 0xcd9   :  { %865 = vrot.lane.b32.xlu0 %v1941_v62, %s1669_s6 }
 0xce1   :  { %1038 = vrot.lane.b32.xlu0 %v1973_v59, %s1669_s6 }
 0xced   :  { %v1110_v16 = vpop.permute.xlu2 %1109 }
 0xcee   :  { %v1112_v17 = vadd.f32 %v1110_v16, %v1102_v14 }
 0xcf0   :  { %1452 = vtanh.f32 %v1112_v17 }
 0xcf6   :  { %v1453_v18 = vpop.eup %1452 }
 0xcf7   :  { %1115 = vrot.lane.b32.xlu1 %v1453_v18, %s1661_s17 }
 0xcff   :  { %375 = vrot.lane.b32.xlu1 %v1840_v27, %s1669_s6 }
 0xd07   :  { %699 = vrot.lane.b32.xlu1 %v1905_v52, %s1669_s6 }
 0xd0f   :  { %872 = vrot.lane.b32.xlu1 %v1945_v48, %s1669_s6 }
 0xd33   :  { %v1186_v36 = vpop.permute.xlu0 %1185 }
 0xd34   :  { %v1188_v62 = vadd.f32 %v1186_v36, %v1178_v21 }
 0xd36   :  { %1454 = vtanh.f32 %v1188_v62 }
 0xd3b   :  { %v369_v0 = vpop.permute.xlu0 %368 }
 0xd3c   :  { %v1455_v59 = vpop.eup %1454  ;;  %372 = vst.msk [vmem:[#allocation17] sm:$0xf] %vm371_vm4, %v369_v0 }
 0xd3d   :  { %1191 = vrot.lane.b32.xlu2 %v1455_v59, %s1661_s17 }
 0xd43   :  { %v541_v20 = vpop.permute.xlu0 %540 }
 0xd44   :  { %544 = vst.msk [vmem:[#allocation18 + $0x4] sm:$0xf] %vm371_vm4, %v541_v20 }
 0xd45   :  { %533 = vrot.lane.b32.xlu2 %v1872_v40, %s1669_s6 }
 0xd4b   :  { %v866_v27 = vpop.permute.xlu0 %865 }
 0xd4c   :  { %869 = vst.msk [vmem:[#allocation17 + $0xc] sm:$0xf] %vm371_vm4, %v866_v27 }
 0xd4d   :  { %706 = vrot.lane.b32.xlu2 %v1909_v56, %s1669_s6 }
 0xd53   :  { %v1039_v52 = vpop.permute.xlu0 %1038 }
 0xd54   :  { %1042 = vst.msk [vmem:[#allocation18 + $0x10] sm:$0xf] %vm371_vm4, %v1039_v52 }
 0xd55   :  { %1031 = vrot.lane.b32.xlu2 %v1969_v13, %s1669_s6 }
 0xd69   :  { %v1116_v48 = vpop.permute.xlu1 %1115 }
 0xd6a   :  { %v1118_v6 = vmul.f32 %v1116_v48, %v1099_v58 }
 0xd6c   :  { %v1195_v22 = vpack.c.bf16 %v1118_v6, %v1118_v6  ;;  %1210 = vrot.lane.b32.xlu0 %v1118_v6, %s1669_s6 }
 0xd6e   :  { %1197 = vrot.lane.b32.xlu1 %v1195_v22, %s1669_s6 }
 0xd71   :  { %v376_v40 = vpop.permute.xlu1 %375 }
 0xd72   :  { %378 = vst.msk [vmem:[#allocation18] sm:$0xf] %vm371_vm4, %v376_v40 }
 0xd74   :  { %1225 = vrot.lane.b32.xlu0 %v1188_v62, %s1670_s4 }
 0xd76   :  { %1215 = vrot.lane.b32.xlu1 %v1112_v17, %s1670_s4 }
 0xd79   :  { %v700_v56 = vpop.permute.xlu1 %699 }
 0xd7a   :  { %703 = vst.msk [vmem:[#allocation17 + $0x8] sm:$0xf] %vm371_vm4, %v700_v56 }
 0xd81   :  { %v873_v23 = vpop.permute.xlu1 %872 }
 0xd82   :  { %876 = vst.msk [vmem:[#allocation18 + $0xc] sm:$0xf] %vm371_vm4, %v873_v23 }
 0xd97   :  { %v1192_v13 = vpop.permute.xlu2 %1191 }
 0xd98   :  { %v1194_v24 = vmul.f32 %v1192_v13, %v1175_v1 }
 0xd9a   :  { %v1202_v26 = vpack.c.bf16 %v1194_v24, %v1194_v24 }
 0xd9c   :  { %1204 = vrot.lane.b32.xlu2 %v1202_v26, %s1669_s6 }
 0xd9f   :  { %v534_v28 = vpop.permute.xlu2 %533 }
 0xda0   :  { %537 = vst.msk [vmem:[#allocation17 + $0x4] sm:$0xf] %vm371_vm4, %v534_v28 }
 0xda4   :  { %1220 = vrot.lane.b32.xlu2 %v1194_v24, %s1669_s6 }
 0xda7   :  { %v707_v30 = vpop.permute.xlu2 %706 }
 0xda8   :  { %710 = vst.msk [vmem:[#allocation18 + $0x8] sm:$0xf] %vm371_vm4, %v707_v30 }
 0xdaf   :  { %v1032_v31 = vpop.permute.xlu2 %1031 }
 0xdb0   :  { %1035 = vst.msk [vmem:[#allocation17 + $0x10] sm:$0xf] %vm371_vm4, %v1032_v31 }
 0xdde   :  { %v1211_v32 = vpop.permute.xlu0 %1210 }
 0xddf   :  { %1213 = vst.msk [vmem:[#allocation2] sm:$0xff] %vm132_vm0, %v1211_v32 }
 0xde0   :  { %v1198_v34 = vpop.permute.xlu1 %1197 }
 0xde1   :  { %1201 = vst.msk [vmem:[#allocation17 + $0x14] sm:$0xf] %vm371_vm4, %v1198_v34 }
 0xde2   :  { %1241 = dma.vmem_to_hbm [thread:$0]  %s1234_s21, 384, %s1236_s3, [#allocation8], %s1661_s17, %s1661_s17, %s1662_s18  }
 0xde6   :  { %v1226_v35 = vpop.permute.xlu0 %1225 }
 0xde7   :  { %1228 = vst.msk [vmem:[#allocation5] sm:$0xff] %vm132_vm0, %v1226_v35 }
 0xde8   :  { %v1216_v10 = vpop.permute.xlu1 %1215 }
 0xde9   :  { %1218 = vst.msk [vmem:[#allocation3] sm:$0xff] %vm132_vm0, %v1216_v10 }
 0xdf6   :  { %v1205_v37 = vpop.permute.xlu2 %1204 }
 0xdf7   :  { %1208 = vst.msk [vmem:[#allocation18 + $0x14] sm:$0xf] %vm371_vm4, %v1205_v37 }
 0xdf8   :  { %1254 = dma.vmem_to_hbm [thread:$0]  %s1247_s8, 384, %s1249_s26, [#allocation19], %s1661_s17, %s1661_s17, %s1662_s18  }
 0xdfe   :  { %v1221_v38 = vpop.permute.xlu2 %1220 }
 0xdff   :  { %1223 = vst.msk [vmem:[#allocation4] sm:$0xff] %vm132_vm0, %v1221_v38 }
 0xe00   :  { %1656 = dma.done.wait [#allocation8], 384  }
 0xe01   :  { %1657 = vsyncadd [#allocation8], 4294966912 }
 0xe02   :  { %1658 = dma.done.wait [#allocation19], 384  }
 0xe03   :  { %1659 = vsyncadd [#allocation19], 4294966912 }
 0xe04   :  { %1263 = vsyncpa [#allocation7], 1 }
 0xe05   :  { %1264 = vsyncpa [#allocation10], 1 }
 0xe06   :  { %1265 = vsyncpa [#allocation13], 1 }
 0xe07   :  { %1266 = vsyncpa [#allocation16], 1 }
 0xe08   :  { %1267 = vsyncpa [#allocation8], 1 }
 0xe09   :  { %1268 = vsyncpa [#allocation19], 1 }

</bundles_post_ra>
